<compile_context>
chip_gen: v5e
topology: v5e:2x2
jax: 0.10.0
libtpu: 0.0.40
codegen_flags: <defaults>
</compile_context>

<pallas_src>
import math
from functools import partial

import jax
import jax.numpy as jnp
from jax.experimental import pallas as pl
from jax.experimental.pallas import tpu as pltpu


# ----------------------------------------------------------------------------
# Kernel
# ----------------------------------------------------------------------------
def sinedec_kernel(x_ref, enc_w_ref, fc1_w_ref, lstm_w_ref, ol01_ref, ol32_ref,
                   ol4_ref, ol5_ref, out_w_ref, bias_ref, out_ref):
    # bias_ref rows: 0 enc_b | 1 fc1_b | 2 lstm_igo_b | 3 ln_w | 4 ln_b |
    #                5 ol01_b | 6 ol32_b | 7 ol4_b | 8 ol5_b | 9 out_b (fcx2v_b)
    H = fc1_w_ref.shape[0]
    f32 = jnp.float32

    Xb = x_ref[...]
    b = bias_ref[...]

    # --- encoder ---
    x0 = jnp.dot(Xb, enc_w_ref[...], preferred_element_type=f32) + b[0:1, 0:H]

    # --- x = softmax(relu(fc1(x)), dim=-1) * x  (exact division) ---
    t = jnp.dot(x0, fc1_w_ref[...], preferred_element_type=f32) + b[1:2, 0:H]
    t = jnp.maximum(t, 0.0)
    t = t - jnp.max(t, axis=-1, keepdims=True)
    e = jnp.exp(t)
    x1 = (e / jnp.sum(e, axis=-1, keepdims=True)) * x0

    # --- LSTM step, zero (h0, c0): fused i|g|o gates (f-gate * c0 == 0) ---
    gates = (jnp.dot(x1, lstm_w_ref[...], preferred_element_type=f32)
             + b[2:3, 0:3 * H])
    i_g = jax.nn.sigmoid(gates[:, 0:H])
    g_g = jnp.tanh(gates[:, H:2 * H])
    o_g = jax.nn.sigmoid(gates[:, 2 * H:3 * H])
    h = o_g * jnp.tanh(i_g * g_g)

    # --- ln_lstm: LayerNorm over the feature dim (exact reference form) ---
    mu = jnp.mean(h, axis=-1, keepdims=True)
    var = jnp.mean((h - mu) ** 2, axis=-1, keepdims=True)
    x2 = (h - mu) / jnp.sqrt(var + 1e-5) * b[3:4, 0:H] + b[4:5, 0:H]

    # --- fused olayer0 & olayer1 (shared input x2): one matmul, one 128-lane cos
    z = jnp.dot(x2, ol01_ref[...], preferred_element_type=f32) + b[5:6, 0:4 * H]
    c = jnp.cos(z)
    xg = (c[:, 0:H] + c[:, H:2 * H]) + x2          # ol0(x2) + x2
    xv = (c[:, 2 * H:3 * H] + c[:, 3 * H:4 * H]) + x2   # ol1(x2) + x2

    # --- fused olayer3(xg) & olayer2(xv): block-diagonal weight on [xg | xv] ---
    gx = jnp.concatenate([xg, xv], axis=-1)        # (bt, 2H)
    z = jnp.dot(gx, ol32_ref[...], preferred_element_type=f32) + b[6:7, 0:4 * H]
    c = jnp.cos(z)
    xg = (c[:, 0:H] + c[:, H:2 * H]) + xg          # ol3(xg) + xg
    xv = (c[:, 2 * H:3 * H] + c[:, 3 * H:4 * H]) + xv   # ol2(xv) + xv

    # --- olayer4, olayer5 on the xg chain (sequential, cannot be fused) ---
    z = jnp.dot(xg, ol4_ref[...], preferred_element_type=f32) + b[7:8, 0:2 * H]
    c = jnp.cos(z)
    xg = (c[:, 0:H] + c[:, H:2 * H]) + xg
    z = jnp.dot(xg, ol5_ref[...], preferred_element_type=f32) + b[8:9, 0:2 * H]
    c = jnp.cos(z)
    xg = (c[:, 0:H] + c[:, H:2 * H]) + xg

    # --- fused output head: one matmul writes the lane-dense slab directly.
    #     out_w rows: [x2 pass-through | xg pass-through + fc2p | fcx2v]
    #     out lanes : [ x (0:H) | xg (H:2H) | y (2H:2H+OUT) | v (3H:3H+OUT) ]
    packed = jnp.concatenate([x2, xg, xv], axis=-1)   # (bt, 3H)
    out_ref[...] = (jnp.dot(packed, out_w_ref[...], preferred_element_type=f32)
                    + b[9:10, :])


# ----------------------------------------------------------------------------
# Wrapper
# ----------------------------------------------------------------------------
def _pick_batch_tile(B):
    """Batch tile: small B -> one step; large B -> big tiles (amortize the
    ~600-cycle per-step overhead) but >= 2 steps so v7x's two TensorCores both
    get work.  Per-step VMEM at bt=1024 is ~1.3 MiB double-buffered in/out."""
    b8 = ((B + 7) // 8) * 8
    if b8 <= 512:
        return b8
    return min(1024, ((b8 + 15) // 16) * 8)    # ~ceil(B/2), rounded to 8


@partial(jax.jit, static_argnames=("out_dim",))
def sinedec_forward(X, packed, out_dim=2):
    enc_w, fc1_w, lstm_w, ol01, ol32, ol4, ol5, out_w, bias = packed
    B, DIN = X.shape
    H = fc1_w.shape[0]
    PW = out_w.shape[1]

    bt = _pick_batch_tile(B)
    B_pad = ((B + bt - 1) // bt) * bt
    if B_pad != B:
        X = jnp.pad(X, ((0, B_pad - B), (0, 0)))
    grid = (B_pad // bt,)

    resident = lambda i: (0, 0)   # weights: constant block -> DMA'd once

    out = pl.pallas_call(
        sinedec_kernel,
        out_shape=jax.ShapeDtypeStruct((B_pad, PW), jnp.float32),
        grid_spec=pltpu.PrefetchScalarGridSpec(
            num_scalar_prefetch=0,
            grid=grid,
            in_specs=[
                pl.BlockSpec((bt, DIN), lambda i: (i, 0)),   # X: tiled over batch
                pl.BlockSpec(enc_w.shape, resident),
                pl.BlockSpec(fc1_w.shape, resident),
                pl.BlockSpec(lstm_w.shape, resident),
                pl.BlockSpec(ol01.shape, resident),
                pl.BlockSpec(ol32.shape, resident),
                pl.BlockSpec(ol4.shape, resident),
                pl.BlockSpec(ol5.shape, resident),
                pl.BlockSpec(out_w.shape, resident),
                pl.BlockSpec(bias.shape, resident),
            ],
            out_specs=pl.BlockSpec((bt, PW), lambda i: (i, 0)),
        ),
        compiler_params=pltpu.CompilerParams(
            dimension_semantics=("parallel",)),
    )(X, enc_w, fc1_w, lstm_w, ol01, ol32, ol4, ol5, out_w, bias)

    x = out[:B, 0:H]
    xg = out[:B, H:2 * H]
    y = out[:B, 2 * H:2 * H + out_dim]
    v = out[:B, 3 * H:3 * H + out_dim]
    return x, xg, y, v


# ----------------------------------------------------------------------------
# Parameters: PyTorch-style init + one-time packing transform
# ----------------------------------------------------------------------------
def init_params(key, input_dim, H, out_dim=2):
    """Deterministic synthetic parameters (PyTorch uniform fan-in init),
    stored in PyTorch layout: Linear weights are (out_features, in_features)."""
    kit = iter(jax.random.split(key, 24))

    def lin(fan_in, fan_out, bias=True):
        bound = 1.0 / math.sqrt(fan_in)
        kw, kb = jax.random.split(next(kit))
        w = jax.random.uniform(kw, (fan_out, fan_in), jnp.float32, -bound, bound)
        b = (jax.random.uniform(kb, (fan_out,), jnp.float32, -bound, bound)
             if bias else None)
        return w, b

    enc_w, enc_b = lin(input_dim, H)
    fc1_w, fc1_b = lin(H, H)

    bound = 1.0 / math.sqrt(H)
    lstm_w_ih = jax.random.uniform(next(kit), (4 * H, H), jnp.float32, -bound, bound)
    lstm_b_ih = jax.random.uniform(next(kit), (4 * H,), jnp.float32, -bound, bound)
    lstm_b_hh = jax.random.uniform(next(kit), (4 * H,), jnp.float32, -bound, bound)

    olayer = []
    for _ in range(6):                       # only olayer[0..5] are used by forward
        lw, lb = lin(H, H)
        rw, rb = lin(H, H)
        olayer.append((lw, lb, rw, rb))

    fcx2v_w, fcx2v_b = lin(H, out_dim)
    fc2p_w, _ = lin(H, out_dim, bias=False)

    return dict(enc_w=enc_w, enc_b=enc_b, fc1_w=fc1_w, fc1_b=fc1_b,
                lstm_w_ih=lstm_w_ih, lstm_b_ih=lstm_b_ih, lstm_b_hh=lstm_b_hh,
                lnw=jnp.ones((H,), jnp.float32), lnb=jnp.zeros((H,), jnp.float32),
                olayer=olayer, fcx2v_w=fcx2v_w, fcx2v_b=fcx2v_b, fc2p_w=fc2p_w)


def pack_params(p):
    """One-time transform: transpose to (in,out), fuse LSTM i|g|o gates,
    fuse olayer pairs (pi pre-folded), and build the fused output head that
    emits the [x | xg | y | v] slab in one matmul.  Each fused matrix is its
    own lane-aligned buffer (no unaligned weight slicing in the kernel)."""
    H = p["fc1_w"].shape[0]
    OUT = p["fcx2v_w"].shape[0]
    PW = max(128, 4 * H)
    PI = jnp.float32(jnp.pi)

    def gate(m, g):                       # PyTorch gate order: i, f, g, o
        return m[g * H:(g + 1) * H]

    enc_w = p["enc_w"].T                                       # (DIN, H)
    fc1_w = p["fc1_w"].T                                       # (H, H)

    w_ih = p["lstm_w_ih"]
    lstm_w = jnp.concatenate(
        [gate(w_ih, 0).T, gate(w_ih, 2).T, gate(w_ih, 3).T], axis=1)   # (H, 3H)
    lstm_b = p["lstm_b_ih"] + p["lstm_b_hh"]
    lstm_b_igo = jnp.concatenate([gate(lstm_b, 0), gate(lstm_b, 2), gate(lstm_b, 3)])

    def ol_wb(i):                         # pi-folded [left | right] olayer i
        lw, lb, rw, rb = p["olayer"][i]
        return (PI * jnp.concatenate([lw.T, rw.T], axis=1),    # (H, 2H)
                PI * jnp.concatenate([lb, rb]))                # (2H,)

    w0, b0 = ol_wb(0)
    w1, b1 = ol_wb(1)
    ol01 = jnp.concatenate([w0, w1], axis=1)                   # (H, 4H)
    b01 = jnp.concatenate([b0, b1])

    w3, b3 = ol_wb(3)
    w2, b2 = ol_wb(2)
    Z = jnp.zeros((H, 2 * H), jnp.float32)
    ol32 = jnp.concatenate(
        [jnp.concatenate([w3, Z], axis=1),
         jnp.concatenate([Z, w2], axis=1)], axis=0)            # (2H, 4H) block-diag
    b32 = jnp.concatenate([b3, b2])

    ol4, b4 = ol_wb(4)
    ol5, b5 = ol_wb(5)

    # fused output head (3H, PW): identity pass-through for x2 and xg, plus the
    # two 2-column heads placed at their final lane offsets.
    eye = jnp.eye(H, dtype=jnp.float32)
    out_w = jnp.zeros((3 * H, PW), jnp.float32)
    out_w = out_w.at[0:H, 0:H].set(eye)                            # x  -> [0, H)
    out_w = out_w.at[H:2 * H, H:2 * H].set(eye)                    # xg -> [H, 2H)
    out_w = out_w.at[H:2 * H, 2 * H:2 * H + OUT].set(p["fc2p_w"].T)    # y
    out_w = out_w.at[2 * H:3 * H, 3 * H:3 * H + OUT].set(p["fcx2v_w"].T)  # v
    out_b = jnp.zeros((PW,), jnp.float32).at[3 * H:3 * H + OUT].set(p["fcx2v_b"])

    def row(v):
        return jnp.pad(v, (0, PW - v.shape[0]))[None, :]

    bias = jnp.concatenate(
        [row(p["enc_b"]), row(p["fc1_b"]), row(lstm_b_igo),
         row(p["lnw"]), row(p["lnb"]),
         row(b01), row(b32), row(b4), row(b5), out_b[None, :]], axis=0)
    bias = jnp.pad(bias, ((0, 16 - bias.shape[0]), (0, 0)))    # (16, PW)

    return (enc_w, fc1_w, lstm_w, ol01, ol32, ol4, ol5, out_w, bias)


# ----------------------------------------------------------------------------
# Pure-JAX reference (mirrors the PyTorch forward) for a correctness check
# ----------------------------------------------------------------------------
def sinedec_reference(X, p):
    H = p["fc1_w"].shape[0]
    x = X @ p["enc_w"].T + p["enc_b"]
    t = jax.nn.relu(x @ p["fc1_w"].T + p["fc1_b"])
    x = jax.nn.softmax(t, axis=-1) * x
    g = x @ p["lstm_w_ih"].T + (p["lstm_b_ih"] + p["lstm_b_hh"])
    i_g = jax.nn.sigmoid(g[:, 0:H])
    g_g = jnp.tanh(g[:, 2 * H:3 * H])
    o_g = jax.nn.sigmoid(g[:, 3 * H:4 * H])
    h = o_g * jnp.tanh(i_g * g_g)
    mu = h.mean(-1, keepdims=True)
    var = ((h - mu) ** 2).mean(-1, keepdims=True)
    x = (h - mu) / jnp.sqrt(var + 1e-5) * p["lnw"] + p["lnb"]

    def ol(xp, i):
        lw, lb, rw, rb = p["olayer"][i]
        return (jnp.cos(jnp.pi * (xp @ lw.T + lb))
                + jnp.cos(jnp.pi * (xp @ rw.T + rb)))

    xg = ol(x, 0) + x
    xv = ol(x, 1) + x
    xv = ol(xv, 2) + xv
    v = xv @ p["fcx2v_w"].T + p["fcx2v_b"]
    xg = ol(xg, 3) + xg
    xg = ol(xg, 4) + xg
    xg = ol(xg, 5) + xg
    y = xg @ p["fc2p_w"].T
    return x, xg, y, v


if __name__ == "__main__":
    B, DIN, H, OUT = 8, 16, 32, 2
    key = jax.random.PRNGKey(0)
    kx, kp = jax.random.split(key)
    X = jax.random.normal(kx, (B, DIN), jnp.float32)

    params = init_params(kp, DIN, H, OUT)
    packed = pack_params(params)

    outs = sinedec_forward(X, packed, out_dim=OUT)
    jax.block_until_ready(outs)
    x_o, xg_o, y_o, v_o = outs
    assert x_o.shape == (B, H) and xg_o.shape == (B, H)
    assert y_o.shape == (B, OUT) and v_o.shape == (B, OUT)

    refs = sinedec_reference(X, params)
    for got, ref in zip(outs, refs):
        err = float(jnp.max(jnp.abs(got - ref)))
        assert err < 5e-3, f"mismatch vs reference: max abs err = {err}"

    print("KERNEL_OK")
</pallas_src>

<mosaic_0001>
module attributes {stable_mosaic.version = 11 : i64} {
  func.func @sinedec_kernel(%arg0: i32, %arg1: memref<8x16xf32, #tpu.memory_space<vmem>>, %arg2: memref<16x32xf32, #tpu.memory_space<vmem>>, %arg3: memref<32x32xf32, #tpu.memory_space<vmem>>, %arg4: memref<32x96xf32, #tpu.memory_space<vmem>>, %arg5: memref<32x128xf32, #tpu.memory_space<vmem>>, %arg6: memref<64x128xf32, #tpu.memory_space<vmem>>, %arg7: memref<32x64xf32, #tpu.memory_space<vmem>>, %arg8: memref<32x64xf32, #tpu.memory_space<vmem>>, %arg9: memref<96x128xf32, #tpu.memory_space<vmem>>, %arg10: memref<16x128xf32, #tpu.memory_space<vmem>>, %arg11: memref<8x128xf32, #tpu.memory_space<vmem>>) attributes {dimension_semantics = [#tpu.dimension_semantics<parallel>], iteration_bounds = array<i64: 1>, scalar_prefetch = 0 : i64, scratch_operands = 0 : i64, tpu.core_type = #tpu.core_type<tc>, window_params = [{transform_indices = @transform_0, window_bounds = array<i64: 8, 16>}, {pipeline_mode = #tpu.pipeline_mode<synchronous>, transform_indices = @transform_1, window_bounds = array<i64: 16, 32>}, {pipeline_mode = #tpu.pipeline_mode<synchronous>, transform_indices = @transform_2, window_bounds = array<i64: 32, 32>}, {pipeline_mode = #tpu.pipeline_mode<synchronous>, transform_indices = @transform_3, window_bounds = array<i64: 32, 96>}, {pipeline_mode = #tpu.pipeline_mode<synchronous>, transform_indices = @transform_4, window_bounds = array<i64: 32, 128>}, {pipeline_mode = #tpu.pipeline_mode<synchronous>, transform_indices = @transform_5, window_bounds = array<i64: 64, 128>}, {pipeline_mode = #tpu.pipeline_mode<synchronous>, transform_indices = @transform_6, window_bounds = array<i64: 32, 64>}, {pipeline_mode = #tpu.pipeline_mode<synchronous>, transform_indices = @transform_7, window_bounds = array<i64: 32, 64>}, {pipeline_mode = #tpu.pipeline_mode<synchronous>, transform_indices = @transform_8, window_bounds = array<i64: 96, 128>}, {pipeline_mode = #tpu.pipeline_mode<synchronous>, transform_indices = @transform_9, window_bounds = array<i64: 16, 128>}, {transform_indices = @transform_10, window_bounds = array<i64: 8, 128>}]} {
    %c0 = arith.constant 0 : index
    %c0_0 = arith.constant 0 : index
    %0 = vector.load %arg1[%c0, %c0_0] : memref<8x16xf32, #tpu.memory_space<vmem>>, vector<8x16xf32>
    %c0_1 = arith.constant 0 : index
    %c0_2 = arith.constant 0 : index
    %1 = vector.load %arg10[%c0_1, %c0_2] : memref<16x128xf32, #tpu.memory_space<vmem>>, vector<16x128xf32>
    %c0_3 = arith.constant 0 : index
    %c0_4 = arith.constant 0 : index
    %2 = vector.load %arg2[%c0_3, %c0_4] : memref<16x32xf32, #tpu.memory_space<vmem>>, vector<16x32xf32>
    %cst = arith.constant dense<0.000000e+00> : vector<8x32xf32>
    %3 = tpu.matmul %0, %2, %cst {dimension_numbers = #tpu.dot_dimension_numbers<[1], [0], [0], [1], [0, 0, 1, 1], [], []>} : vector<8x16xf32>, vector<16x32xf32>, vector<8x32xf32> -> vector<8x32xf32>
    %4 = vector.extract_strided_slice %1 {offsets = [0, 0], sizes = [1, 32], strides = [1, 1]} : vector<16x128xf32> to vector<1x32xf32>
    %5 = vector.broadcast %4 : vector<1x32xf32> to vector<8x32xf32>
    %6 = arith.addf %3, %5 : vector<8x32xf32>
    %c0_5 = arith.constant 0 : index
    %c0_6 = arith.constant 0 : index
    %7 = vector.load %arg3[%c0_5, %c0_6] : memref<32x32xf32, #tpu.memory_space<vmem>>, vector<32x32xf32>
    %cst_7 = arith.constant dense<0.000000e+00> : vector<8x32xf32>
    %8 = tpu.matmul %6, %7, %cst_7 {dimension_numbers = #tpu.dot_dimension_numbers<[1], [0], [0], [1], [0, 0, 1, 1], [], []>} : vector<8x32xf32>, vector<32x32xf32>, vector<8x32xf32> -> vector<8x32xf32>
    %9 = vector.extract_strided_slice %1 {offsets = [1, 0], sizes = [1, 32], strides = [1, 1]} : vector<16x128xf32> to vector<1x32xf32>
    %10 = vector.broadcast %9 : vector<1x32xf32> to vector<8x32xf32>
    %11 = arith.addf %8, %10 : vector<8x32xf32>
    %cst_8 = arith.constant 0.000000e+00 : f32
    %12 = vector.broadcast %cst_8 : f32 to vector<8x32xf32>
    %13 = arith.maximumf %11, %12 : vector<8x32xf32>
    %cst_9 = arith.constant dense<0xFF800000> : vector<8xf32>
    %14 = vector.multi_reduction <maximumf>, %13, %cst_9 [1] : vector<8x32xf32> to vector<8xf32>
    %15 = vector.shape_cast %14 : vector<8xf32> to vector<8x1xf32>
    %16 = vector.broadcast %15 : vector<8x1xf32> to vector<8x32xf32>
    %17 = arith.subf %13, %16 : vector<8x32xf32>
    %18 = math.exp %17 : vector<8x32xf32>
    %cst_10 = arith.constant dense<0.000000e+00> : vector<8xf32>
    %19 = vector.multi_reduction <add>, %18, %cst_10 [1] : vector<8x32xf32> to vector<8xf32>
    %20 = vector.shape_cast %19 : vector<8xf32> to vector<8x1xf32>
    %21 = vector.broadcast %20 : vector<8x1xf32> to vector<8x32xf32>
    %22 = arith.divf %18, %21 : vector<8x32xf32>
    %23 = arith.mulf %22, %6 : vector<8x32xf32>
    %c0_11 = arith.constant 0 : index
    %c0_12 = arith.constant 0 : index
    %24 = vector.load %arg4[%c0_11, %c0_12] : memref<32x96xf32, #tpu.memory_space<vmem>>, vector<32x96xf32>
    %cst_13 = arith.constant dense<0.000000e+00> : vector<8x96xf32>
    %25 = tpu.matmul %23, %24, %cst_13 {dimension_numbers = #tpu.dot_dimension_numbers<[1], [0], [0], [1], [0, 0, 1, 1], [], []>} : vector<8x32xf32>, vector<32x96xf32>, vector<8x96xf32> -> vector<8x96xf32>
    %26 = vector.extract_strided_slice %1 {offsets = [2, 0], sizes = [1, 96], strides = [1, 1]} : vector<16x128xf32> to vector<1x96xf32>
    %27 = vector.broadcast %26 : vector<1x96xf32> to vector<8x96xf32>
    %28 = arith.addf %25, %27 : vector<8x96xf32>
    %29 = vector.extract_strided_slice %28 {offsets = [0, 0], sizes = [8, 32], strides = [1, 1]} : vector<8x96xf32> to vector<8x32xf32>
    %30 = arith.negf %29 : vector<8x32xf32>
    %31 = math.exp %30 : vector<8x32xf32>
    %cst_14 = arith.constant 1.000000e+00 : f32
    %32 = vector.broadcast %cst_14 : f32 to vector<8x32xf32>
    %33 = arith.addf %32, %31 : vector<8x32xf32>
    %34 = arith.divf %32, %33 : vector<8x32xf32>
    %35 = vector.extract_strided_slice %28 {offsets = [0, 32], sizes = [8, 32], strides = [1, 1]} : vector<8x96xf32> to vector<8x32xf32>
    %36 = math.tanh %35 : vector<8x32xf32>
    %37 = vector.extract_strided_slice %28 {offsets = [0, 64], sizes = [8, 32], strides = [1, 1]} : vector<8x96xf32> to vector<8x32xf32>
    %38 = arith.negf %37 : vector<8x32xf32>
    %39 = math.exp %38 : vector<8x32xf32>
    %cst_15 = arith.constant 1.000000e+00 : f32
    %40 = vector.broadcast %cst_15 : f32 to vector<8x32xf32>
    %41 = arith.addf %40, %39 : vector<8x32xf32>
    %42 = arith.divf %40, %41 : vector<8x32xf32>
    %43 = arith.mulf %34, %36 : vector<8x32xf32>
    %44 = math.tanh %43 : vector<8x32xf32>
    %45 = arith.mulf %42, %44 : vector<8x32xf32>
    %cst_16 = arith.constant dense<0.000000e+00> : vector<8xf32>
    %46 = vector.multi_reduction <add>, %45, %cst_16 [1] : vector<8x32xf32> to vector<8xf32>
    %47 = vector.shape_cast %46 : vector<8xf32> to vector<8x1xf32>
    %cst_17 = arith.constant 3.200000e+01 : f32
    %48 = vector.broadcast %cst_17 : f32 to vector<8x1xf32>
    %49 = arith.divf %47, %48 : vector<8x1xf32>
    %50 = vector.broadcast %49 : vector<8x1xf32> to vector<8x32xf32>
    %51 = arith.subf %45, %50 : vector<8x32xf32>
    %52 = arith.mulf %51, %51 : vector<8x32xf32>
    %cst_18 = arith.constant dense<0.000000e+00> : vector<8xf32>
    %53 = vector.multi_reduction <add>, %52, %cst_18 [1] : vector<8x32xf32> to vector<8xf32>
    %54 = vector.shape_cast %53 : vector<8xf32> to vector<8x1xf32>
    %cst_19 = arith.constant 3.200000e+01 : f32
    %55 = vector.broadcast %cst_19 : f32 to vector<8x1xf32>
    %56 = arith.divf %54, %55 : vector<8x1xf32>
    %57 = vector.broadcast %49 : vector<8x1xf32> to vector<8x32xf32>
    %58 = arith.subf %45, %57 : vector<8x32xf32>
    %cst_20 = arith.constant 9.99999974E-6 : f32
    %59 = vector.broadcast %cst_20 : f32 to vector<8x1xf32>
    %60 = arith.addf %56, %59 : vector<8x1xf32>
    %61 = math.sqrt %60 : vector<8x1xf32>
    %62 = vector.broadcast %61 : vector<8x1xf32> to vector<8x32xf32>
    %63 = arith.divf %58, %62 : vector<8x32xf32>
    %64 = vector.extract_strided_slice %1 {offsets = [3, 0], sizes = [1, 32], strides = [1, 1]} : vector<16x128xf32> to vector<1x32xf32>
    %65 = vector.broadcast %64 : vector<1x32xf32> to vector<8x32xf32>
    %66 = arith.mulf %63, %65 : vector<8x32xf32>
    %67 = vector.extract_strided_slice %1 {offsets = [4, 0], sizes = [1, 32], strides = [1, 1]} : vector<16x128xf32> to vector<1x32xf32>
    %68 = vector.broadcast %67 : vector<1x32xf32> to vector<8x32xf32>
    %69 = arith.addf %66, %68 : vector<8x32xf32>
    %c0_21 = arith.constant 0 : index
    %c0_22 = arith.constant 0 : index
    %70 = vector.load %arg5[%c0_21, %c0_22] : memref<32x128xf32, #tpu.memory_space<vmem>>, vector<32x128xf32>
    %cst_23 = arith.constant dense<0.000000e+00> : vector<8x128xf32>
    %71 = tpu.matmul %69, %70, %cst_23 {dimension_numbers = #tpu.dot_dimension_numbers<[1], [0], [0], [1], [0, 0, 1, 1], [], []>} : vector<8x32xf32>, vector<32x128xf32>, vector<8x128xf32> -> vector<8x128xf32>
    %72 = vector.extract_strided_slice %1 {offsets = [5, 0], sizes = [1, 128], strides = [1, 1]} : vector<16x128xf32> to vector<1x128xf32>
    %73 = vector.broadcast %72 : vector<1x128xf32> to vector<8x128xf32>
    %74 = arith.addf %71, %73 : vector<8x128xf32>
    %75 = math.cos %74 : vector<8x128xf32>
    %76 = vector.extract_strided_slice %75 {offsets = [0, 0], sizes = [8, 32], strides = [1, 1]} : vector<8x128xf32> to vector<8x32xf32>
    %77 = vector.extract_strided_slice %75 {offsets = [0, 32], sizes = [8, 32], strides = [1, 1]} : vector<8x128xf32> to vector<8x32xf32>
    %78 = arith.addf %76, %77 : vector<8x32xf32>
    %79 = arith.addf %78, %69 : vector<8x32xf32>
    %80 = vector.extract_strided_slice %75 {offsets = [0, 64], sizes = [8, 32], strides = [1, 1]} : vector<8x128xf32> to vector<8x32xf32>
    %81 = vector.extract_strided_slice %75 {offsets = [0, 96], sizes = [8, 32], strides = [1, 1]} : vector<8x128xf32> to vector<8x32xf32>
    %82 = arith.addf %80, %81 : vector<8x32xf32>
    %83 = arith.addf %82, %69 : vector<8x32xf32>
    %84 = tpu.concatenate %79, %83 in 1 : vector<8x32xf32>, vector<8x32xf32> -> vector<8x64xf32>
    %c0_24 = arith.constant 0 : index
    %c0_25 = arith.constant 0 : index
    %85 = vector.load %arg6[%c0_24, %c0_25] : memref<64x128xf32, #tpu.memory_space<vmem>>, vector<64x128xf32>
    %cst_26 = arith.constant dense<0.000000e+00> : vector<8x128xf32>
    %86 = tpu.matmul %84, %85, %cst_26 {dimension_numbers = #tpu.dot_dimension_numbers<[1], [0], [0], [1], [0, 0, 1, 1], [], []>} : vector<8x64xf32>, vector<64x128xf32>, vector<8x128xf32> -> vector<8x128xf32>
    %87 = vector.extract_strided_slice %1 {offsets = [6, 0], sizes = [1, 128], strides = [1, 1]} : vector<16x128xf32> to vector<1x128xf32>
    %88 = vector.broadcast %87 : vector<1x128xf32> to vector<8x128xf32>
    %89 = arith.addf %86, %88 : vector<8x128xf32>
    %90 = math.cos %89 : vector<8x128xf32>
    %91 = vector.extract_strided_slice %90 {offsets = [0, 0], sizes = [8, 32], strides = [1, 1]} : vector<8x128xf32> to vector<8x32xf32>
    %92 = vector.extract_strided_slice %90 {offsets = [0, 32], sizes = [8, 32], strides = [1, 1]} : vector<8x128xf32> to vector<8x32xf32>
    %93 = arith.addf %91, %92 : vector<8x32xf32>
    %94 = arith.addf %93, %79 : vector<8x32xf32>
    %95 = vector.extract_strided_slice %90 {offsets = [0, 64], sizes = [8, 32], strides = [1, 1]} : vector<8x128xf32> to vector<8x32xf32>
    %96 = vector.extract_strided_slice %90 {offsets = [0, 96], sizes = [8, 32], strides = [1, 1]} : vector<8x128xf32> to vector<8x32xf32>
    %97 = arith.addf %95, %96 : vector<8x32xf32>
    %98 = arith.addf %97, %83 : vector<8x32xf32>
    %c0_27 = arith.constant 0 : index
    %c0_28 = arith.constant 0 : index
    %99 = vector.load %arg7[%c0_27, %c0_28] : memref<32x64xf32, #tpu.memory_space<vmem>>, vector<32x64xf32>
    %cst_29 = arith.constant dense<0.000000e+00> : vector<8x64xf32>
    %100 = tpu.matmul %94, %99, %cst_29 {dimension_numbers = #tpu.dot_dimension_numbers<[1], [0], [0], [1], [0, 0, 1, 1], [], []>} : vector<8x32xf32>, vector<32x64xf32>, vector<8x64xf32> -> vector<8x64xf32>
    %101 = vector.extract_strided_slice %1 {offsets = [7, 0], sizes = [1, 64], strides = [1, 1]} : vector<16x128xf32> to vector<1x64xf32>
    %102 = vector.broadcast %101 : vector<1x64xf32> to vector<8x64xf32>
    %103 = arith.addf %100, %102 : vector<8x64xf32>
    %104 = math.cos %103 : vector<8x64xf32>
    %105 = vector.extract_strided_slice %104 {offsets = [0, 0], sizes = [8, 32], strides = [1, 1]} : vector<8x64xf32> to vector<8x32xf32>
    %106 = vector.extract_strided_slice %104 {offsets = [0, 32], sizes = [8, 32], strides = [1, 1]} : vector<8x64xf32> to vector<8x32xf32>
    %107 = arith.addf %105, %106 : vector<8x32xf32>
    %108 = arith.addf %107, %94 : vector<8x32xf32>
    %c0_30 = arith.constant 0 : index
    %c0_31 = arith.constant 0 : index
    %109 = vector.load %arg8[%c0_30, %c0_31] : memref<32x64xf32, #tpu.memory_space<vmem>>, vector<32x64xf32>
    %cst_32 = arith.constant dense<0.000000e+00> : vector<8x64xf32>
    %110 = tpu.matmul %108, %109, %cst_32 {dimension_numbers = #tpu.dot_dimension_numbers<[1], [0], [0], [1], [0, 0, 1, 1], [], []>} : vector<8x32xf32>, vector<32x64xf32>, vector<8x64xf32> -> vector<8x64xf32>
    %111 = vector.extract_strided_slice %1 {offsets = [8, 0], sizes = [1, 64], strides = [1, 1]} : vector<16x128xf32> to vector<1x64xf32>
    %112 = vector.broadcast %111 : vector<1x64xf32> to vector<8x64xf32>
    %113 = arith.addf %110, %112 : vector<8x64xf32>
    %114 = math.cos %113 : vector<8x64xf32>
    %115 = vector.extract_strided_slice %114 {offsets = [0, 0], sizes = [8, 32], strides = [1, 1]} : vector<8x64xf32> to vector<8x32xf32>
    %116 = vector.extract_strided_slice %114 {offsets = [0, 32], sizes = [8, 32], strides = [1, 1]} : vector<8x64xf32> to vector<8x32xf32>
    %117 = arith.addf %115, %116 : vector<8x32xf32>
    %118 = arith.addf %117, %108 : vector<8x32xf32>
    %119 = tpu.concatenate %69, %118, %98 in 1 : vector<8x32xf32>, vector<8x32xf32>, vector<8x32xf32> -> vector<8x96xf32>
    %c0_33 = arith.constant 0 : index
    %c0_34 = arith.constant 0 : index
    %120 = vector.load %arg9[%c0_33, %c0_34] : memref<96x128xf32, #tpu.memory_space<vmem>>, vector<96x128xf32>
    %cst_35 = arith.constant dense<0.000000e+00> : vector<8x128xf32>
    %121 = tpu.matmul %119, %120, %cst_35 {dimension_numbers = #tpu.dot_dimension_numbers<[1], [0], [0], [1], [0, 0, 1, 1], [], []>} : vector<8x96xf32>, vector<96x128xf32>, vector<8x128xf32> -> vector<8x128xf32>
    %122 = vector.extract_strided_slice %1 {offsets = [9, 0], sizes = [1, 128], strides = [1, 1]} : vector<16x128xf32> to vector<1x128xf32>
    %123 = vector.broadcast %122 : vector<1x128xf32> to vector<8x128xf32>
    %124 = arith.addf %121, %123 : vector<8x128xf32>
    %c0_36 = arith.constant 0 : index
    %c0_37 = arith.constant 0 : index
    %125 = vector.load %arg11[%c0_36, %c0_37] : memref<8x128xf32, #tpu.memory_space<vmem>>, vector<8x128xf32>
    tpu.vector_store %arg11[%c0_36, %c0_37], %124 {strides = array<i32>} : memref<8x128xf32, #tpu.memory_space<vmem>>, vector<8x128xf32>,
    return
  }
  func.func @transform_0(%arg0: i32) -> (i32, i32) {
    %c0_i32 = arith.constant 0 : i32
    %c0_i32_0 = arith.constant 0 : i32
    return %arg0, %c0_i32 : i32, i32
  }
  func.func @transform_1(%arg0: i32) -> (i32, i32) {
    %c0_i32 = arith.constant 0 : i32
    %c0_i32_0 = arith.constant 0 : i32
    %c0_i32_1 = arith.constant 0 : i32
    return %c0_i32, %c0_i32_0 : i32, i32
  }
  func.func @transform_2(%arg0: i32) -> (i32, i32) {
    %c0_i32 = arith.constant 0 : i32
    %c0_i32_0 = arith.constant 0 : i32
    %c0_i32_1 = arith.constant 0 : i32
    return %c0_i32, %c0_i32_0 : i32, i32
  }
  func.func @transform_3(%arg0: i32) -> (i32, i32) {
    %c0_i32 = arith.constant 0 : i32
    %c0_i32_0 = arith.constant 0 : i32
    %c0_i32_1 = arith.constant 0 : i32
    return %c0_i32, %c0_i32_0 : i32, i32
  }
  func.func @transform_4(%arg0: i32) -> (i32, i32) {
    %c0_i32 = arith.constant 0 : i32
    %c0_i32_0 = arith.constant 0 : i32
    %c0_i32_1 = arith.constant 0 : i32
    return %c0_i32, %c0_i32_0 : i32, i32
  }
  func.func @transform_5(%arg0: i32) -> (i32, i32) {
    %c0_i32 = arith.constant 0 : i32
    %c0_i32_0 = arith.constant 0 : i32
    %c0_i32_1 = arith.constant 0 : i32
    return %c0_i32, %c0_i32_0 : i32, i32
  }
  func.func @transform_6(%arg0: i32) -> (i32, i32) {
    %c0_i32 = arith.constant 0 : i32
    %c0_i32_0 = arith.constant 0 : i32
    %c0_i32_1 = arith.constant 0 : i32
    return %c0_i32, %c0_i32_0 : i32, i32
  }
  func.func @transform_7(%arg0: i32) -> (i32, i32) {
    %c0_i32 = arith.constant 0 : i32
    %c0_i32_0 = arith.constant 0 : i32
    %c0_i32_1 = arith.constant 0 : i32
    return %c0_i32, %c0_i32_0 : i32, i32
  }
  func.func @transform_8(%arg0: i32) -> (i32, i32) {
    %c0_i32 = arith.constant 0 : i32
    %c0_i32_0 = arith.constant 0 : i32
    %c0_i32_1 = arith.constant 0 : i32
    return %c0_i32, %c0_i32_0 : i32, i32
  }
  func.func @transform_9(%arg0: i32) -> (i32, i32) {
    %c0_i32 = arith.constant 0 : i32
    %c0_i32_0 = arith.constant 0 : i32
    %c0_i32_1 = arith.constant 0 : i32
    return %c0_i32, %c0_i32_0 : i32, i32
  }
  func.func @transform_10(%arg0: i32) -> (i32, i32) {
    %c0_i32 = arith.constant 0 : i32
    %c0_i32_0 = arith.constant 0 : i32
    return %arg0, %c0_i32 : i32, i32
  }
}

</mosaic_0001>

<bundles_post_ra>
// kernel: sinedec_forward.1
= control target key start
LH: loop header
LB: loop body
LE: loop exit
PB: predicated region body
PF: predicated region fallthrough
CT: control target
= control target key end

     0   :  { %15 = vsyncpa [#allocation3], 0  ;;  %s1980_s0 = inlined_call_operand.vmem [shape: f32[8,16], index: 0, kind: input, shape index: {}]   ;;  %s1981_s1 = inlined_call_operand.hbm [shape: f32[16,32], index: 1, kind: input, shape index: {}]   ;;  %s1982_s2 = inlined_call_operand.hbm [shape: f32[32,32], index: 2, kind: input, shape index: {}]   ;;  %s1983_s3 = inlined_call_operand.hbm [shape: f32[32,96], index: 3, kind: input, shape index: {}]   ;;  %s1984_s4 = inlined_call_operand.hbm [shape: f32[32,128], index: 4, kind: input, shape index: {}]   ;;  %s1985_s5 = inlined_call_operand.hbm [shape: f32[64,128], index: 5, kind: input, shape index: {}]   ;;  %s1986_s6 = inlined_call_operand.hbm [shape: f32[32,64], index: 6, kind: input, shape index: {}]   ;;  %s1987_s7 = inlined_call_operand.hbm [shape: f32[32,64], index: 7, kind: input, shape index: {}]   ;;  %s1988_s8 = inlined_call_operand.hbm [shape: f32[96,128], index: 8, kind: input, shape index: {}]   ;;  %s1989_s9 = inlined_call_operand.hbm [shape: f32[16,128], index: 9, kind: input, shape index: {}]   ;;  %s1990_s10 = inlined_call_operand.vmem [shape: f32[8,128], index: 10, kind: output, shape index: {}]  }
   0x1   :  { %16 = vsyncpa [#allocation5], 0 }
   0x2   :  { %17 = vsyncpa [#allocation8], 0 }
   0x3   :  { %18 = vsyncpa [#allocation11], 0 }
   0x4   :  { %19 = vsyncpa [#allocation14], 0  ;;  %s39_s15 = sshll.u32 %s1982_s2, 4  ;;  %s1491_s16 = smov [#allocation4]   ;;  %s40_s15 = int_to_ptr.hbm [resolvable:$true] %s39_s15 }
   0x5   :  { %s41_s17 = sshll.u32 %s1491_s16, 4  ;;  %s65_s20 = sshll.u32 %s1984_s4, 4  ;;  %s42_s17 = int_to_ptr.vmem [resolvable:$true] %s41_s17  ;;  %s66_s20 = int_to_ptr.hbm [resolvable:$true] %s65_s20 }
   0x6   :  { %s1492_s21 = smov 128   ;;  %s1493_s22 = smov 8  }
   0x7   :  { %47 = dma.hbm_to_vmem [thread:$0]  %s40_s15, 512, %s42_s17, [#allocation5], %s1492_s21, %s1492_s21, %s1493_s22  }
   0x8   :  { %s1494_s23 = smov [#allocation7]   ;;  %s91_s2 = sshll.u32 %s1986_s6, 4  ;;  %s92_s2 = int_to_ptr.hbm [resolvable:$true] %s91_s2 }
   0x9   :  { %s67_s24 = sshll.u32 %s1494_s23, 4  ;;  %s117_s28 = sshll.u32 %s1988_s8, 4  ;;  %s68_s24 = int_to_ptr.vmem [resolvable:$true] %s67_s24  ;;  %s118_s28 = int_to_ptr.hbm [resolvable:$true] %s117_s28 }
   0xa   :  { %73 = dma.hbm_to_vmem [thread:$0]  %s66_s20, 512, %s68_s24, [#allocation8], %s1492_s21, %s1492_s21, %s1493_s22  }
   0xb   :  { %s1495_s29 = smov [#allocation10]   ;;  %s1496_s11 = smov [#allocation13]  }
   0xc   :  { %s93_s30 = sshll.u32 %s1495_s29, 4  ;;  %s119_s6 = sshll.u32 %s1496_s11, 4  ;;  %s94_s30 = int_to_ptr.vmem [resolvable:$true] %s93_s30  ;;  %s120_s6 = int_to_ptr.vmem [resolvable:$true] %s119_s6 }
   0xd   :  { %99 = dma.hbm_to_vmem [thread:$0]  %s92_s2, 512, %s94_s30, [#allocation11], %s1492_s21, %s1492_s21, %s1493_s22  }
   0xe   :  { %s26_s14 = sshll.u32 %s1981_s1, 4  ;;  %s52_s16 = sshll.u32 %s1983_s3, 4  ;;  %s27_s14 = int_to_ptr.hbm [resolvable:$true] %s26_s14  ;;  %s53_s16 = int_to_ptr.hbm [resolvable:$true] %s52_s16 }
   0xf   :  { %125 = dma.hbm_to_vmem [thread:$0]  %s118_s28, 1536, %s120_s6, [#allocation14], %s1492_s21, %s1492_s21, %s1493_s22  }
  0x10   :  { %s1497_s17 = smov [#allocation2]   ;;  %s1498_s19 = smov [#allocation6]  }
  0x11   :  { %s28_s18 = sshll.u32 %s1497_s17, 4  ;;  %s54_s1 = sshll.u32 %s1498_s19, 4  ;;  %s29_s18 = int_to_ptr.vmem [resolvable:$true] %s28_s18  ;;  %s55_s1 = int_to_ptr.vmem [resolvable:$true] %s54_s1 }
  0x12   :  { %34 = dma.hbm_to_vmem [thread:$0]  %s27_s14, 256, %s29_s18, [#allocation3], %s1492_s21, %s1492_s21, %s1493_s22  }
  0x13   :  { %s78_s24 = sshll.u32 %s1985_s5, 4  ;;  %s104_s26 = sshll.u32 %s1987_s7, 4  ;;  %s79_s24 = int_to_ptr.hbm [resolvable:$true] %s78_s24  ;;  %s105_s26 = int_to_ptr.hbm [resolvable:$true] %s104_s26 }
  0x14   :  { %60 = dma.hbm_to_vmem [thread:$0]  %s53_s16, 512, %s55_s1, [#allocation5], %s1492_s21, %s1492_s21, %s1493_s22  }
  0x15   :  { %s1499_s2 = smov [#allocation9]   ;;  %s1500_s27 = smov [#allocation12]  }
  0x16   :  { %s80_s4 = sshll.u32 %s1499_s2, 4  ;;  %s106_s5 = sshll.u32 %s1500_s27, 4  ;;  %s81_s4 = int_to_ptr.vmem [resolvable:$true] %s80_s4  ;;  %s107_s5 = int_to_ptr.vmem [resolvable:$true] %s106_s5 }
  0x17   :  { %86 = dma.hbm_to_vmem [thread:$0]  %s79_s24, 1024, %s81_s4, [#allocation8], %s1492_s21, %s1492_s21, %s1493_s22  }
  0x18   :  { %s130_s30 = sshll.u32 %s1989_s9, 4  ;;  %s1501_s7 = smov [#allocation15]   ;;  %s131_s30 = int_to_ptr.hbm [resolvable:$true] %s130_s30 }
  0x19   :  { %112 = dma.hbm_to_vmem [thread:$0]  %s105_s26, 512, %s107_s5, [#allocation11], %s1492_s21, %s1492_s21, %s1493_s22  }
  0x1a   :  { %s132_s11 = sshll.u32 %s1501_s7, 4  ;;  %s133_s11 = int_to_ptr.vmem [resolvable:$true] %s132_s11 }
  0x1b   :  { %138 = dma.hbm_to_vmem [thread:$0]  %s131_s30, 256, %s133_s11, [#allocation14], %s1492_s21, %s1492_s21, %s1493_s22  }
  0x1c   :  { %1481 = dma.done.wait [#allocation3], 256  }
  0x1d   :  { %1482 = vsyncadd [#allocation3], 4294967040 }
  0x1e   :  { %1483 = dma.done.wait [#allocation5], 1024  }
  0x1f   :  { %1484 = vsyncadd [#allocation5], 4294966272 }
  0x20   :  { %1485 = dma.done.wait [#allocation8], 1536  }
  0x21   :  { %1486 = vsyncadd [#allocation8], 4294965760 }
  0x22   :  { %1487 = dma.done.wait [#allocation11], 1024  }
  0x23   :  { %1488 = vsyncadd [#allocation11], 4294966272 }
  0x24   :  { %1489 = dma.done.wait [#allocation14], 1792  }
  0x25   :  { %1490 = vsyncadd [#allocation14], 4294965504  ;;  %v179_v0 = vld [vmem:[#allocation2 + $0x8] sm:$0xff]  ;;  %v178_v1 = vld [vmem:[#allocation2] sm:$0xff]  ;;  %vm181_vm0 = vcmask 130048   ;;  %vm210_vm1 = vcmask 261120  }
  0x26   :  { %199 = vmatpush.msra.mxu0 %v179_v0  ;;  %v175_v2 = vld [vmem:[%s1980_s0] sm:$0xff]  ;;  %v208_v3 = vld [vmem:[#allocation4 + $0x18] sm:$0xff]  ;;  %v206_v5 = vld [vmem:[#allocation4 + $0x8] sm:$0xff]  ;;  %s1502_s0 = smov 96   ;;  %s1503_s21 = smov 64   ;;  %v1504_v62 = vmov 32.0  }
  0x27   :  { %v207_v4 = vld [vmem:[#allocation4 + $0x10] sm:$0xff]  ;;  %226 = vmatpush.msra.mxu1 %v208_v3  ;;  %v205_v6 = vld [vmem:[#allocation4] sm:$0xff]  ;;  %v263_v21 = vld [vmem:[#allocation6 + $0x18] sm:$0xff]  ;;  %s1512_s22 = smov 32  }
  0x28   :  { %200 = vmatpush.msra.mxu0 %v178_v1  ;;  %v1625_v7 = vld [vmem:[#allocation15] sm:$0xff]  ;;  %v262_v22 = vld [vmem:[#allocation6 + $0x10] sm:$0xff]  ;;  %280 = vmatpush.msra.mxu2 %v263_v21  ;;  %v261_v23 = vld [vmem:[#allocation6 + $0x8] sm:$0xff] }
  0x29   :  { %1204 = vmatmul.msk.f32.vlgmr.msra.gmra.mxu0 %vm181_vm0, %v175_v2  ;;  %227 = vmatpush.msra.mxu1 %v207_v4  ;;  %v180_v8 = vperm.slane %v1625_v7, 0  ;;  %v209_v11 = vperm.slane %v1625_v7, 1  ;;  %v260_v24 = vld [vmem:[#allocation6] sm:$0xff]  ;;  %v264_v38 = vperm.slane %v1625_v7, 2  ;;  %v387_v21 = vld [vmem:[#allocation7 + $0x18] sm:$0xff] }
  0x2a   :  { %281 = vmatpush.msra.mxu2 %v262_v22  ;;  %v386_v22 = vld [vmem:[#allocation7 + $0x10] sm:$0xff] }
  0x2b   :  { %228 = vmatpush.msra.mxu1 %v206_v5 }
  0x2c   :  { %282 = vmatpush.msra.mxu2 %v261_v23 }
  0x2d   :  { %229 = vmatpush.msra.mxu1 %v205_v6 }
  0x2e   :  { %283 = vmatpush.msra.mxu2 %v260_v24  ;;  %v385_v24 = vld [vmem:[#allocation7 + $0x8] sm:$0xff] }
  0x2f   :  { %406 = vmatpush.msrb.mxu1 %v387_v21 }
  0x31   :  { %407 = vmatpush.msrb.mxu1 %v386_v22 }
  0x33   :  { %408 = vmatpush.msrb.mxu1 %v385_v24 }
  0xa6   :  { %v202_v9 = vpop.f32.mrf.mxu0 }
  0xa7   :  { %v203_v10 = vadd.f32 %v202_v9, %v180_v8 }
  0xa9   :  { %1205 = vmatmul.msk.f32.vlgmr.msra.gmra.mxu1 %vm210_vm1, %v203_v10 }
 0x126   :  { %v231_v12 = vpop.f32.mrf.mxu1 }
 0x127   :  { %v232_v13 = vadd.f32 %v231_v12, %v209_v11  ;;  %v378_v11 = vperm.slane %v1625_v7, 4 }
 0x129   :  { %v234_v14 = vmax.f32 %v232_v13, 0.0 }
 0x12b   :  { %v235_v15 = vsel %vm210_vm1, %v234_v14, -inf }
 0x12c   :  { %236 = vmax.xlane.f32.xlu0 %v235_v15 }
 0x19f   :  { %v237_v16 = vpop.xlane.xlu0 %236 }
 0x1a0   :  { %v238_v17 = vsub.f32 %v234_v14, %v237_v16 }
 0x1a2   :  { %v239_v18 = vmul.f32 1.442695, %v238_v17 }
 0x1a4   :  { %1247 = vpow2.f32 %v239_v18 }
 0x1aa   :  { %v1248_v19 = vpop.eup %1247 }
 0x1ab   :  { %v241_v20 = vsel %vm210_vm1, %v1248_v19, 0.0 }
 0x1ac   :  { %242 = vadd.xlane.f32.xlu0 %v241_v20 }
 0x21f   :  { %v243_v25 = vpop.xlane.xlu0 %242 }
 0x220   :  { %1249 = vrcp.f32 %v243_v25  ;;  %v255_v29 = vand.u32 2147483648, %v243_v25  ;;  %v253_v31 = vand.u32 2147483647, %v243_v25  ;;  %vm249_vm3 = vweird.f32 %v243_v25 }
 0x222   :  { %v256_v33 = vor.u32 1.1754944e-38, %v255_v29  ;;  %vm254_vm5 = vcmp.eq.f32.partialorder %v253_v31, 8.507059e+37 }
 0x226   :  { %v1250_v26 = vpop.eup %1249 }
 0x227   :  { %v245_v27 = vmul.f32 %v1250_v26, %v243_v25  ;;  %vm250_vm2 = vweird.f32 %v1250_v26 }
 0x228   :  { %vm251_vm4 = vmor %vm249_vm3, %vm250_vm2 }
 0x229   :  { %v246_v28 = vsub.f32 1.0, %v245_v27 }
 0x22b   :  { %v247_v30 = vmul.f32 %v1250_v26, %v246_v28 }
 0x22d   :  { %v248_v32 = vadd.f32 %v1250_v26, %v247_v30 }
 0x22f   :  { %v252_v34 = vsel %vm251_vm4, %v1250_v26, %v248_v32  ;;  %v384_v26 = vld [vmem:[#allocation7] sm:$0xff] }
 0x230   :  { %v257_v35 = vsel %vm254_vm5, %v256_v33, %v252_v34  ;;  %409 = vmatpush.msrb.mxu1 %v384_v26 }
 0x231   :  { %v258_v36 = vmul.f32 %v1248_v19, %v257_v35 }
 0x233   :  { %v259_v37 = vmul.f32 %v258_v36, %v203_v10  ;;  %v372_v10 = vperm.slane %v1625_v7, 3 }
 0x235   :  { %1206 = vmatmul.msk.f32.vlgmr.msra.gmra.mxu2 %vm210_vm1, %v259_v37 }
 0x2b8   :  { %v285_v39 = vpop.f32.mrf.mxu2 }
 0x2b9   :  { %v286_v40 = vadd.f32 %v285_v39, %v264_v38 }
 0x2bb   :  { %1251 = vtanh.f32 %v286_v40  ;;  %v1207_v42 = vmul.f32 -1.442695, %v286_v40 }
 0x2bd   :  { %1253 = vpow2.f32 %v1207_v42 }
 0x2c1   :  { %v1252_v41 = vpop.eup %1251 }
 0x2c2   :  { %309 = vrot.lane.b32.xlu1 %v1252_v41, %s1502_s0 }
 0x2c3   :  { %v1254_v43 = vpop.eup %1253 }
 0x2c4   :  { %v291_v44 = vadd.f32 1.0, %v1254_v43 }
 0x2c6   :  { %1255 = vrcp.f32 %v291_v44  ;;  %v303_v50 = vand.u32 2147483648, %v291_v44  ;;  %vm297_vm7 = vweird.f32 %v291_v44  ;;  %v301_v51 = vand.u32 2147483647, %v291_v44 }
 0x2c8   :  { %v304_v53 = vor.u32 1.1754944e-38, %v303_v50  ;;  %vm302_vm9 = vcmp.eq.f32.partialorder %v301_v51, 8.507059e+37 }
 0x2cc   :  { %v1256_v45 = vpop.eup %1255 }
 0x2cd   :  { %v293_v46 = vmul.f32 %v1256_v45, %v291_v44  ;;  %vm298_vm6 = vweird.f32 %v1256_v45 }
 0x2ce   :  { %vm299_vm8 = vmor %vm297_vm7, %vm298_vm6 }
 0x2cf   :  { %v294_v47 = vsub.f32 1.0, %v293_v46 }
 0x2d1   :  { %v295_v48 = vmul.f32 %v1256_v45, %v294_v47  ;;  %v388_v47 = vperm.slane %v1625_v7, 5 }
 0x2d3   :  { %v296_v49 = vadd.f32 %v1256_v45, %v295_v48 }
 0x2d5   :  { %v300_v52 = vsel %vm299_vm8, %v1256_v45, %v296_v49 }
 0x2d6   :  { %v305_v55 = vsel %vm302_vm9, %v304_v53, %v300_v52 }
 0x334   :  { %v310_v54 = vpop.permute.xlu1 %309 }
 0x335   :  { %v312_v56 = vmul.f32 %v310_v54, %v305_v55 }
 0x337   :  { %1257 = vtanh.f32 %v312_v56 }
 0x338   :  { %1259 = vrcp.f32 %v1504_v62 }
 0x33d   :  { %v1258_v57 = vpop.eup %1257 }
 0x33e   :  { %315 = vrot.lane.b32.xlu1 %v1258_v57, %s1503_s21  ;;  %v1260_v63 = vpop.eup %1259 }
 0x33f   :  { %v327_v0 = vmul.f32 32.0, %v1260_v63  ;;  %vm331_vm10 = vweird.f32 %v1260_v63 }
 0x341   :  { %v328_v1 = vsub.f32 1.0, %v327_v0 }
 0x343   :  { %v329_v2 = vmul.f32 %v1260_v63, %v328_v1 }
 0x345   :  { %v330_v3 = vadd.f32 %v1260_v63, %v329_v2  ;;  %v1507_v2 = vmov 1326507024  }
 0x347   :  { %v332_v4 = vsel %vm331_vm10, %v1260_v63, %v330_v3  ;;  %v1506_v63 = vmov 920167782  }
 0x3b0   :  { %v316_v58 = vpop.permute.xlu1 %315 }
 0x3b1   :  { %v318_v59 = vmul.f32 %v316_v58, %v305_v55 }
 0x3b3   :  { %320 = vrot.lane.b32.xlu2 %v318_v59, %s1503_s21 }
 0x40d   :  { %v321_v60 = vpop.permute.xlu2 %320 }
 0x40e   :  { %v323_v61 = vsel %vm210_vm1, %v321_v60, 0.0 }
 0x40f   :  { %324 = vadd.xlane.f32.xlu2 %v323_v61  ;;  %v1505_v61 = vmov 2102212464  }
 0x482   :  { %v325_v5 = vpop.xlane.xlu2 %324 }
 0x483   :  { %v333_v6 = vmul.f32 %v332_v4, %v325_v5 }
 0x485   :  { %v334_v8 = vsub.f32 %v318_v59, %v333_v6  ;;  %v1509_v6 = vmov 2475754826  }
 0x487   :  { %v335_v9 = vmul.f32 %v334_v8, %v334_v8 }
 0x489   :  { %337 = vrot.lane.b32.xlu0 %v335_v9, %s1503_s21 }
 0x491   :  { %374 = vrot.lane.b32.xlu0 %v372_v10, %s1503_s21  ;;  %v1510_v10 = vmov 2131351028  }
 0x499   :  { %380 = vrot.lane.b32.xlu0 %v378_v11, %s1503_s21 }
 0x4fb   :  { %v338_v12 = vpop.permute.xlu0 %337 }
 0x4fc   :  { %v340_v13 = vsel %vm210_vm1, %v338_v12, 0.0 }
 0x4fd   :  { %341 = vadd.xlane.f32.xlu1 %v340_v13 }
 0x503   :  { %v375_v33 = vpop.permute.xlu0 %374 }
 0x50b   :  { %v381_v43 = vpop.permute.xlu0 %380 }
 0x570   :  { %v342_v14 = vpop.xlane.xlu1 %341 }
 0x571   :  { %v343_v15 = vmul.f32 %v342_v14, %v332_v4  ;;  %v1508_v4 = vmov 683565275  }
 0x573   :  { %v344_v16 = vadd.f32 1e-05, %v343_v15 }
 0x575   :  { %1261 = vrsqrt.f32 %v344_v16  ;;  %vm352_vm11 = vcmp.eq.f32.partialorder %v344_v16, inf  ;;  %v355_v28 = vand.u32 2147483648, %v344_v16  ;;  %vm354_vm12 = vcmp.eq.f32.partialorder %v344_v16, 0.0 }
 0x57b   :  { %v1262_v17 = vpop.eup %1261 }
 0x57c   :  { %v346_v18 = vmul.f32 %v1262_v17, %v344_v16 }
 0x57e   :  { %v347_v19 = vmul.f32 %v1262_v17, %v346_v18 }
 0x580   :  { %v348_v20 = vmul.f32 0.5, %v347_v19 }
 0x582   :  { %v349_v23 = vsub.f32 1.5, %v348_v20 }
 0x584   :  { %v350_v25 = vmul.f32 %v1262_v17, %v349_v23 }
 0x586   :  { %v351_v27 = vmul.f32 %v350_v25, %v344_v16 }
 0x588   :  { %v353_v29 = vsel %vm352_vm11, %v344_v16, %v351_v27 }
 0x589   :  { %v356_v30 = vsel %vm354_vm12, %v355_v28, %v353_v29 }
 0x58a   :  { %1263 = vrcp.f32 %v356_v30  ;;  %v368_v35 = vand.u32 2147483648, %v356_v30  ;;  %v366_v37 = vand.u32 2147483647, %v356_v30  ;;  %vm362_vm14 = vweird.f32 %v356_v30 }
 0x58c   :  { %v369_v39 = vor.u32 1.1754944e-38, %v368_v35  ;;  %vm367_vm0 = vcmp.eq.f32.partialorder %v366_v37, 8.507059e+37 }
 0x590   :  { %v1264_v31 = vpop.eup %1263 }
 0x591   :  { %v358_v32 = vmul.f32 %v1264_v31, %v356_v30  ;;  %vm363_vm13 = vweird.f32 %v1264_v31 }
 0x592   :  { %vm364_vm15 = vmor %vm362_vm14, %vm363_vm13 }
 0x593   :  { %v359_v34 = vsub.f32 1.0, %v358_v32 }
 0x595   :  { %v360_v36 = vmul.f32 %v1264_v31, %v359_v34 }
 0x597   :  { %v361_v38 = vadd.f32 %v1264_v31, %v360_v36 }
 0x599   :  { %v365_v40 = vsel %vm364_vm15, %v1264_v31, %v361_v38 }
 0x59a   :  { %v370_v41 = vsel %vm367_vm0, %v369_v39, %v365_v40 }
 0x59b   :  { %v371_v42 = vmul.f32 %v370_v41, %v334_v8 }
 0x59d   :  { %v377_v44 = vmul.f32 %v375_v33, %v371_v42 }
 0x59f   :  { %v1644_v45 = vadd.f32 %v381_v43, %v377_v44 }
 0x5a1   :  { %390 = vrot.lane.b32.xlu2 %v1644_v45, %s1503_s21 }
 0x5fb   :  { %v1648_v46 = vpop.permute.xlu2 %390 }
 0x5fc   :  { %1208 = vmatmul.msk.f32.vlgmr.msrb.gmra.mxu1 %vm210_vm1, %v1648_v46 }
 0x679   :  { %v411_v48 = vpop.f32.mrf.mxu1 }
 0x67a   :  { %v1653_v49 = vadd.f32 %v411_v48, %v388_v47 }
 0x67c   :  { %v417_v50 = vand.u32 2139095040, %v1653_v49  ;;  %v414_v53 = vand.u32 2147483647, %v1653_v49  ;;  %vm416_vm14 = vcmp.lt.s32.totalorder %v1653_v49, 0 }
 0x67e   :  { %v418_v51 = vshrl.u32 %v417_v50, 23  ;;  %v421_v55 = vand.u32 8388607, %v414_v53  ;;  %vm1720_vm15 = vcmp.le.f32.partialorder %v414_v53, 0.7853982 }
 0x680   :  { %v1209_v52 = vadd.s32 4294967169, %v418_v51  ;;  %v422_v59 = vor.u32 8388608, %v421_v55  ;;  %v1511_v51 = vmov 0  }
 0x682   :  { %v424_v54 = vadd.s32 1, %v1209_v52  ;;  %v1678_v17 = vshll.u32 %v422_v59, 8 }
 0x684   :  { %vm425_vm2 = vcmp.gt.s32.totalorder %v424_v54, 0  ;;  %v463_v27 = vand.u32 65535, %v1678_v17  ;;  %v464_v29 = vshrl.u32 %v1678_v17, 16 }
 0x685   :  { %v426_v56 = vsel %vm425_vm2, %v424_v54, 0 }
 0x686   :  { %v428_v57 = vand.u32 31, %v426_v56  ;;  %v1661_v60 = vshrl.u32 %v426_v56, 5 }
 0x688   :  { %v1659_v58 = vsub.s32 32, %v428_v57  ;;  %v440_v62 = vshll.u32 %v1505_v61, %v428_v57  ;;  %v443_v0 = vshll.u32 %v1506_v63, %v428_v57  ;;  %v431_v5 = vshll.u32 %v1508_v4, %v428_v57 }
 0x689   :  { %v434_v9 = vshll.u32 %v1509_v6, %v428_v57  ;;  %v437_v12 = vshll.u32 %v1510_v10, %v428_v57  ;;  %vm449_vm3 = vcmp.lt.s32.totalorder %v1661_v60, 4  ;;  %vm446_vm4 = vcmp.lt.s32.totalorder %v1661_v60, 1 }
 0x68a   :  { %v441_v1 = vshrl.u32 %v1506_v63, %v1659_v58  ;;  %v444_v3 = vshrl.u32 %v1507_v2, %v1659_v58  ;;  %v432_v8 = vshrl.u32 %v1509_v6, %v1659_v58  ;;  %v435_v11 = vshrl.u32 %v1510_v10, %v1659_v58 }
 0x68b   :  { %v438_v13 = vshrl.u32 %v1505_v61, %v1659_v58  ;;  %vm448_vm5 = vcmp.lt.s32.totalorder %v1661_v60, 3  ;;  %vm447_vm6 = vcmp.lt.s32.totalorder %v1661_v60, 2  ;;  %v430_v57 = vshrl.u32 %v1508_v4, %v1659_v58 }
 0x68c   :  { %v442_v14 = vor.u32 %v441_v1, %v440_v62  ;;  %v445_v15 = vor.u32 %v444_v3, %v443_v0  ;;  %v433_v16 = vor.u32 %v432_v8, %v431_v5  ;;  %v436_v18 = vor.u32 %v435_v11, %v434_v9 }
 0x68d   :  { %v439_v19 = vor.u32 %v438_v13, %v437_v12 }
 0x68e   :  { %v455_v20 = vsel %vm449_vm3, %v442_v14, 920167782  ;;  %v459_v21 = vsel %vm449_vm3, %v445_v15, 1326507024  ;;  %v454_v22 = vsel %vm446_vm4, %v433_v16, %v436_v18  ;;  %v450_v5 = vsel %vm446_vm4, %v430_v57, %v433_v16 }
 0x68f   :  { %v456_v23 = vsel %vm448_vm5, %v439_v19, %v455_v20  ;;  %v458_v24 = vsel %vm446_vm4, %v436_v18, %v439_v19  ;;  %v460_v26 = vsel %vm448_vm5, %v442_v14, %v459_v21  ;;  %v451_v54 = vsel %vm449_vm3, %v439_v19, 2102212464 }
 0x690   :  { %v457_v25 = vsel %vm447_vm6, %v454_v22, %v456_v23  ;;  %v461_v28 = vsel %vm447_vm6, %v458_v24, %v460_v26  ;;  %v452_v8 = vsel %vm448_vm5, %v436_v18, %v451_v54  ;;  %vm557_vm4 = vweird.f32 %v1653_v49 }
 0x691   :  { %v487_v30 = vand.u32 65535, %v457_v25  ;;  %v488_v31 = vshrl.u32 %v457_v25, 16  ;;  %v465_v32 = vand.u32 65535, %v461_v28  ;;  %v466_v33 = vshrl.u32 %v461_v28, 16 }
 0x692   :  { %v453_v15 = vsel %vm447_vm6, %v450_v5, %v452_v8  ;;  %vm590_vm5 = vcmask 523264  }
 0x693   :  { %v490_v34 = vmul.u32 %v488_v31, %v463_v27  ;;  %v491_v35 = vmul.u32 %v487_v30, %v464_v29  ;;  %v468_v36 = vmul.u32 %v466_v33, %v463_v27  ;;  %v469_v37 = vmul.u32 %v465_v32, %v464_v29 }
 0x694   :  { %v489_v38 = vmul.u32 %v487_v30, %v463_v27  ;;  %v467_v40 = vmul.u32 %v465_v32, %v463_v27  ;;  %v492_v42 = vmul.u32 %v488_v31, %v464_v29  ;;  %v470_v43 = vmul.u32 %v466_v33, %v464_v29 }
 0x695   :  { %v493_v39 = vshll.u32 %v490_v34, 16  ;;  %v471_v41 = vshll.u32 %v468_v36, 16  ;;  %v495_v44 = vshll.u32 %v491_v35, 16  ;;  %v473_v48 = vshll.u32 %v469_v37, 16 }
 0x696   :  { %v494_v1 = vshrl.u32 %v490_v34, 16  ;;  %v472_v9 = vshrl.u32 %v468_v36, 16  ;;  %v496_v12 = vshrl.u32 %v491_v35, 16  ;;  %v474_v14 = vshrl.u32 %v469_v37, 16 }
 0x697   :  { %vm497_vm7 = vc.u32 %v489_v38, %v493_v39  ;;  %v499_v47 = vadd.s32 %v493_v39, %v489_v38  ;;  %vm475_vm8 = vc.u32 %v467_v40, %v471_v41  ;;  %v477_v50 = vadd.s32 %v471_v41, %v467_v40 }
 0x698   :  { %v498_v52 = vsel %vm497_vm7, 1, %v1511_v51  ;;  %v476_v55 = vsel %vm475_vm8, 1, %v1511_v51  ;;  %v507_v23 = vmul.u32 %v1678_v17, %v453_v15 }
 0x699   :  { %v500_v56 = vadd.s32 %v498_v52, %v492_v42  ;;  %vm501_vm9 = vc.u32 %v499_v47, %v495_v44  ;;  %v478_v59 = vadd.s32 %v476_v55, %v470_v43  ;;  %vm479_vm10 = vc.u32 %v477_v50, %v473_v48 }
 0x69a   :  { %v502_v62 = vsel %vm501_vm9, 1, %v1511_v51  ;;  %v480_v0 = vsel %vm479_vm10, 1, %v1511_v51  ;;  %v503_v21 = vadd.s32 %v499_v47, %v495_v44 }
 0x69b   :  { %v504_v3 = vadd.s32 %v502_v62, %v500_v56  ;;  %v482_v11 = vadd.s32 %v480_v0, %v478_v59 }
 0x69d   :  { %v505_v13 = vadd.s32 %v504_v3, %v494_v1  ;;  %v483_v58 = vadd.s32 %v482_v11, %v472_v9 }
 0x69f   :  { %v506_v19 = vadd.s32 %v505_v13, %v496_v12  ;;  %v484_v20 = vadd.s32 %v483_v58, %v474_v14 }
 0x6a1   :  { %v510_v22 = vadd.s32 1, %v506_v19  ;;  %vm509_vm11 = vc.u32 %v484_v20, %v503_v21  ;;  %v508_v32 = vadd.s32 %v503_v21, %v484_v20 }
 0x6a3   :  { %v511_v16 = vsel %vm509_vm11, %v510_v22, %v506_v19  ;;  %v588_v22 = vld [vmem:[#allocation9 + $0x38] sm:$0xff] }
 0x6a4   :  { %v512_v24 = vadd.s32 %v511_v16, %v507_v23  ;;  %v587_v23 = vld [vmem:[#allocation9 + $0x30] sm:$0xff]  ;;  %602 = vmatpush.msrb.mxu0 %v588_v22  ;;  %v586_v16 = vld [vmem:[#allocation9 + $0x28] sm:$0xff] }
 0x6a6   :  { %v513_v25 = vadd.s32 536870912, %v512_v24  ;;  %603 = vmatpush.msrb.mxu0 %v587_v23 }
 0x6a8   :  { %v514_v18 = vshrl.u32 %v513_v25, 30  ;;  %604 = vmatpush.msrb.mxu0 %v586_v16  ;;  %v584_v25 = vld [vmem:[#allocation9 + $0x18] sm:$0xff] }
 0x6aa   :  { %v515_v26 = vshll.u32 %v514_v18, 30  ;;  %v538_v55 = vsub.s32 4, %v514_v18 }
 0x6ac   :  { %v516_v27 = vsub.s32 %v512_v24, %v515_v26  ;;  %v539_v0 = vsel %vm416_vm14, %v538_v55, %v514_v18  ;;  %v585_v24 = vld [vmem:[#allocation9 + $0x20] sm:$0xff]  ;;  %v583_v18 = vld [vmem:[#allocation9 + $0x10] sm:$0xff]  ;;  %v582_v26 = vld [vmem:[#allocation9 + $0x8] sm:$0xff] }
 0x6ad   :  { %v541_v53 = vsel %vm1720_vm15, 0, %v539_v0  ;;  %605 = vmatpush.msrb.mxu0 %v585_v24 }
 0x6ae   :  { %vm517_vm12 = vcmp.lt.s32.totalorder %v516_v27, 0  ;;  %v518_v28 = vsub.s32 0, %v516_v27  ;;  %v558_v12 = vand.u32 3, %v541_v53 }
 0x6af   :  { %606 = vmatpush.msrb.mxu0 %v584_v25 }
 0x6b0   :  { %v519_v29 = vsel %vm517_vm12, %v518_v28, %v516_v27  ;;  %vm560_vm0 = vcmp.eq.s32.totalorder %v558_v12, 0  ;;  %vm563_vm2 = vcmp.eq.s32.totalorder %v558_v12, 2  ;;  %vm559_vm3 = vcmp.lt.s32.totalorder %v558_v12, 2 }
 0x6b1   :  { %v520_v30 = vclz %v519_v29  ;;  %607 = vmatpush.msrb.mxu0 %v583_v18  ;;  %v581_v29 = vld [vmem:[#allocation9] sm:$0xff] }
 0x6b3   :  { %v1210_v31 = vadd.s32 4294967294, %v520_v30  ;;  %608 = vmatpush.msrb.mxu0 %v582_v26 }
 0x6b5   :  { %vm1211_vm13 = vcmp.lt.s32.totalorder %v1210_v31, 0  ;;  %609 = vmatpush.msrb.mxu0 %v581_v29 }
 0x6b6   :  { %v523_v60 = vsel %vm1211_vm13, 0, %v1210_v31 }
 0x6b7   :  { %v524_v33 = vsub.s32 32, %v523_v60  ;;  %v528_v34 = vsub.s32 4294967266, %v523_v60  ;;  %v525_v35 = vshll.u32 %v516_v27, %v523_v60 }
 0x6b9   :  { %v526_v36 = vshrl.u32 %v508_v32, %v524_v33  ;;  %v529_v17 = vadd.s32 127, %v528_v34  ;;  %v589_v32 = vperm.slane %v1625_v7, 6 }
 0x6bb   :  { %v527_v37 = vor.u32 %v526_v36, %v525_v35  ;;  %v530_v38 = vshll.u32 %v529_v17, 23 }
 0x6bd   :  { %v531_v39 = vor.u32 4788187, %v530_v38  ;;  %v534_v41 = vcvt.s32.f32 %v527_v37 }
 0x6bf   :  { %v532_v40 = vand.u32 2147483647, %v531_v39 }
 0x6c1   :  { %v535_v42 = vmul.f32 %v534_v41, %v532_v40 }
 0x6c3   :  { %v536_v43 = vxor.u32 2147483648, %v535_v42 }
 0x6c5   :  { %v537_v47 = vsel %vm416_vm14, %v536_v43, %v535_v42 }
 0x6c6   :  { %v540_v48 = vsel %vm1720_vm15, %v1653_v49, %v537_v47 }
 0x6c7   :  { %v542_v50 = vmul.f32 %v540_v48, %v540_v48 }
 0x6c9   :  { %v543_v52 = vmul.f32 -0.001358992, %v542_v50  ;;  %v550_v54 = vmul.f32 -0.00019511016, %v542_v50 }
 0x6cb   :  { %v544_v56 = vadd.f32 0.041655596, %v543_v52  ;;  %v551_v57 = vadd.f32 0.008332121, %v550_v54 }
 0x6cd   :  { %v545_v59 = vmul.f32 %v544_v56, %v542_v50  ;;  %v552_v62 = vmul.f32 %v551_v57, %v542_v50 }
 0x6cf   :  { %v546_v1 = vadd.f32 -0.4999988, %v545_v59  ;;  %v553_v3 = vadd.f32 -0.16666654, %v552_v62 }
 0x6d1   :  { %v547_v5 = vmul.f32 %v546_v1, %v542_v50  ;;  %v554_v8 = vmul.f32 %v553_v3, %v542_v50 }
 0x6d3   :  { %v548_v9 = vadd.f32 1.0, %v547_v5  ;;  %v555_v11 = vadd.f32 1.0, %v554_v8 }
 0x6d5   :  { %v556_v13 = vmul.f32 %v555_v11, %v540_v48  ;;  %v564_v14 = vxor.u32 2147483648, %v548_v9 }
 0x6d7   :  { %v561_v58 = vxor.u32 2147483648, %v556_v13  ;;  %v565_v19 = vsel %vm563_vm2, %v564_v14, %v556_v13 }
 0x6d9   :  { %v562_v15 = vsel %vm560_vm0, %v548_v9, %v561_v58 }
 0x6da   :  { %v566_v20 = vsel %vm559_vm3, %v562_v15, %v565_v19 }
 0x6db   :  { %v567_v21 = vsel %vm557_vm4, nan, %v566_v20 }
 0x6dc   :  { %569 = vrot.lane.b32.xlu0 %v567_v21, %s1502_s0 }
 0x74e   :  { %v570_v27 = vpop.permute.xlu0 %569 }
 0x74f   :  { %v572_v49 = vadd.f32 %v570_v27, %v567_v21 }
 0x751   :  { %v1732_v28 = vadd.f32 %v572_v49, %v1644_v45  ;;  %v1737_v30 = vadd.f32 %v572_v49, %v1648_v46 }
 0x753   :  { %577 = vrot.lane.b32.xlu1 %v1732_v28, %s1502_s0 }
 0x7c5   :  { %v578_v31 = vpop.permute.xlu1 %577 }
 0x7c6   :  { %v580_v60 = vsel %vm210_vm1, %v1737_v30, %v578_v31 }
 0x7c7   :  { %1212 = vmatmul.msk.f32.vlgmr.msrb.gmra.mxu0 %vm590_vm5, %v580_v60 }
 0x844   :  { %v611_v33 = vpop.f32.mrf.mxu0 }
 0x845   :  { %v1743_v45 = vadd.f32 %v611_v33, %v589_v32 }
 0x847   :  { %v617_v34 = vand.u32 2139095040, %v1743_v45  ;;  %v614_v17 = vand.u32 2147483647, %v1743_v45  ;;  %vm616_vm3 = vcmp.lt.s32.totalorder %v1743_v45, 0 }
 0x849   :  { %v618_v35 = vshrl.u32 %v617_v34, 23  ;;  %v621_v38 = vand.u32 8388607, %v614_v17  ;;  %vm1802_vm4 = vcmp.le.f32.partialorder %v614_v17, 0.7853982 }
 0x84b   :  { %v1213_v36 = vadd.s32 4294967169, %v618_v35  ;;  %v622_v42 = vor.u32 8388608, %v621_v38 }
 0x84d   :  { %v624_v37 = vadd.s32 1, %v1213_v36  ;;  %v1761_v3 = vshll.u32 %v622_v42, 8 }
 0x84f   :  { %vm625_vm6 = vcmp.gt.s32.totalorder %v624_v37, 0  ;;  %v663_v15 = vand.u32 65535, %v1761_v3  ;;  %v664_v20 = vshrl.u32 %v1761_v3, 16 }
 0x850   :  { %v626_v39 = vsel %vm625_vm6, %v624_v37, 0 }
 0x851   :  { %v628_v40 = vand.u32 31, %v626_v39  ;;  %v1749_v43 = vshrl.u32 %v626_v39, 5 }
 0x853   :  { %v629_v41 = vsub.s32 32, %v628_v40  ;;  %v640_v44 = vshll.u32 %v1505_v61, %v628_v40  ;;  %v643_v47 = vshll.u32 %v1506_v63, %v628_v40  ;;  %v631_v52 = vshll.u32 %v1508_v4, %v628_v40 }
 0x854   :  { %v634_v55 = vshll.u32 %v1509_v6, %v628_v40  ;;  %v637_v57 = vshll.u32 %v1510_v10, %v628_v40  ;;  %vm649_vm7 = vcmp.lt.s32.totalorder %v1749_v43, 4  ;;  %vm646_vm8 = vcmp.lt.s32.totalorder %v1749_v43, 1 }
 0x855   :  { %v641_v48 = vshrl.u32 %v1506_v63, %v629_v41  ;;  %v644_v50 = vshrl.u32 %v1507_v2, %v629_v41  ;;  %v632_v54 = vshrl.u32 %v1509_v6, %v629_v41  ;;  %v635_v56 = vshrl.u32 %v1510_v10, %v629_v41 }
 0x856   :  { %v638_v59 = vshrl.u32 %v1505_v61, %v629_v41  ;;  %vm648_vm9 = vcmp.lt.s32.totalorder %v1749_v43, 3  ;;  %vm647_vm10 = vcmp.lt.s32.totalorder %v1749_v43, 2  ;;  %v630_v42 = vshrl.u32 %v1508_v4, %v629_v41 }
 0x857   :  { %v642_v62 = vor.u32 %v641_v48, %v640_v44  ;;  %v645_v0 = vor.u32 %v644_v50, %v643_v47  ;;  %v633_v1 = vor.u32 %v632_v54, %v631_v52  ;;  %v636_v53 = vor.u32 %v635_v56, %v634_v55 }
 0x858   :  { %v639_v5 = vor.u32 %v638_v59, %v637_v57 }
 0x859   :  { %v655_v8 = vsel %vm649_vm7, %v642_v62, 920167782  ;;  %v659_v9 = vsel %vm649_vm7, %v645_v0, 1326507024  ;;  %v654_v11 = vsel %vm646_vm8, %v633_v1, %v636_v53  ;;  %v650_v54 = vsel %vm646_vm8, %v630_v42, %v633_v1 }
 0x85a   :  { %v656_v12 = vsel %vm648_vm9, %v639_v5, %v655_v8  ;;  %v658_v13 = vsel %vm646_vm8, %v636_v53, %v639_v5  ;;  %v660_v58 = vsel %vm648_vm9, %v642_v62, %v659_v9  ;;  %v651_v38 = vsel %vm649_vm7, %v639_v5, 2102212464 }
 0x85b   :  { %v657_v14 = vsel %vm647_vm10, %v654_v11, %v656_v12  ;;  %v661_v19 = vsel %vm647_vm10, %v658_v13, %v660_v58  ;;  %v652_v55 = vsel %vm648_vm9, %v636_v53, %v651_v38  ;;  %vm757_vm9 = vweird.f32 %v1743_v45 }
 0x85c   :  { %v687_v21 = vand.u32 65535, %v657_v14  ;;  %v688_v22 = vshrl.u32 %v657_v14, 16  ;;  %v665_v23 = vand.u32 65535, %v661_v19  ;;  %v666_v16 = vshrl.u32 %v661_v19, 16 }
 0x85d   :  { %v653_v5 = vsel %vm647_vm10, %v650_v54, %v652_v55 }
 0x85e   :  { %v690_v24 = vmul.u32 %v688_v22, %v663_v15  ;;  %v691_v25 = vmul.u32 %v687_v21, %v664_v20  ;;  %v668_v18 = vmul.u32 %v666_v16, %v663_v15  ;;  %v669_v26 = vmul.u32 %v665_v23, %v664_v20 }
 0x85f   :  { %v689_v27 = vmul.u32 %v687_v21, %v663_v15  ;;  %v667_v29 = vmul.u32 %v665_v23, %v663_v15  ;;  %v692_v60 = vmul.u32 %v688_v22, %v664_v20  ;;  %v670_v32 = vmul.u32 %v666_v16, %v664_v20 }
 0x860   :  { %v693_v49 = vshll.u32 %v690_v24, 16  ;;  %v671_v31 = vshll.u32 %v668_v18, 16  ;;  %v695_v33 = vshll.u32 %v691_v25, 16  ;;  %v673_v35 = vshll.u32 %v669_v26, 16 }
 0x861   :  { %v694_v50 = vshrl.u32 %v690_v24, 16  ;;  %v672_v56 = vshrl.u32 %v668_v18, 16  ;;  %v696_v59 = vshrl.u32 %v691_v25, 16  ;;  %v674_v0 = vshrl.u32 %v669_v26, 16 }
 0x862   :  { %vm697_vm11 = vc.u32 %v689_v27, %v693_v49  ;;  %v699_v34 = vadd.s32 %v693_v49, %v689_v27  ;;  %vm675_vm12 = vc.u32 %v667_v29, %v671_v31  ;;  %v677_v36 = vadd.s32 %v671_v31, %v667_v29  ;;  %v778_v29 = vld [vmem:[#allocation10 + $0x18] sm:$0xff]  ;;  %v777_v31 = vld [vmem:[#allocation10 + $0x10] sm:$0xff] }
 0x863   :  { %v698_v37 = vsel %vm697_vm11, 1, %v1511_v51  ;;  %v676_v39 = vsel %vm675_vm12, 1, %v1511_v51  ;;  %v707_v13 = vmul.u32 %v1761_v3, %v653_v5  ;;  %795 = vmatpush.msra.mxu1 %v778_v29 }
 0x864   :  { %v700_v40 = vadd.s32 %v698_v37, %v692_v60  ;;  %vm701_vm13 = vc.u32 %v699_v34, %v695_v33  ;;  %v678_v44 = vadd.s32 %v676_v39, %v670_v32  ;;  %vm679_vm14 = vc.u32 %v677_v36, %v673_v35 }
 0x865   :  { %v702_v47 = vsel %vm701_vm13, 1, %v1511_v51  ;;  %v680_v48 = vsel %vm679_vm14, 1, %v1511_v51  ;;  %v703_v11 = vadd.s32 %v699_v34, %v695_v33  ;;  %796 = vmatpush.msra.mxu1 %v777_v31 }
 0x866   :  { %v704_v52 = vadd.s32 %v702_v47, %v700_v40  ;;  %v682_v57 = vadd.s32 %v680_v48, %v678_v44 }
 0x868   :  { %v705_v62 = vadd.s32 %v704_v52, %v694_v50  ;;  %v683_v41 = vadd.s32 %v682_v57, %v672_v56 }
 0x86a   :  { %v706_v8 = vadd.s32 %v705_v62, %v696_v59  ;;  %v684_v9 = vadd.s32 %v683_v41, %v674_v0 }
 0x86c   :  { %v710_v12 = vadd.s32 1, %v706_v8  ;;  %vm709_vm15 = vc.u32 %v684_v9, %v703_v11  ;;  %v708_v16 = vadd.s32 %v703_v11, %v684_v9 }
 0x86e   :  { %v711_v1 = vsel %vm709_vm15, %v710_v12, %v706_v8 }
 0x86f   :  { %v712_v14 = vadd.s32 %v711_v1, %v707_v13 }
 0x871   :  { %v713_v58 = vadd.s32 536870912, %v712_v14 }
 0x873   :  { %v714_v53 = vshrl.u32 %v713_v58, 30  ;;  %v775_v58 = vld [vmem:[#allocation10] sm:$0xff] }
 0x875   :  { %v715_v15 = vshll.u32 %v714_v53, 30  ;;  %v738_v44 = vsub.s32 4, %v714_v53 }
 0x877   :  { %v716_v19 = vsub.s32 %v712_v14, %v715_v15  ;;  %v739_v54 = vsel %vm616_vm3, %v738_v44, %v714_v53  ;;  %v776_v14 = vld [vmem:[#allocation10 + $0x8] sm:$0xff] }
 0x878   :  { %v741_v17 = vsel %vm1802_vm4, 0, %v739_v54  ;;  %797 = vmatpush.msra.mxu1 %v776_v14 }
 0x879   :  { %vm717_vm0 = vcmp.lt.s32.totalorder %v716_v19, 0  ;;  %v718_v20 = vsub.s32 0, %v716_v19  ;;  %v758_v41 = vand.u32 3, %v741_v17 }
 0x87a   :  { %798 = vmatpush.msra.mxu1 %v775_v58 }
 0x87b   :  { %v719_v21 = vsel %vm717_vm0, %v718_v20, %v716_v19  ;;  %vm760_vm6 = vcmp.eq.s32.totalorder %v758_v41, 0  ;;  %vm763_vm7 = vcmp.eq.s32.totalorder %v758_v41, 2  ;;  %vm759_vm8 = vcmp.lt.s32.totalorder %v758_v41, 2 }
 0x87c   :  { %v720_v22 = vclz %v719_v21 }
 0x87e   :  { %v1214_v23 = vadd.s32 4294967294, %v720_v22 }
 0x880   :  { %vm1215_vm2 = vcmp.lt.s32.totalorder %v1214_v23, 0 }
 0x881   :  { %v723_v43 = vsel %vm1215_vm2, 0, %v1214_v23 }
 0x882   :  { %v724_v24 = vsub.s32 32, %v723_v43  ;;  %v728_v25 = vsub.s32 4294967266, %v723_v43  ;;  %v725_v18 = vshll.u32 %v716_v19, %v723_v43 }
 0x884   :  { %v726_v26 = vshrl.u32 %v708_v16, %v724_v24  ;;  %v729_v3 = vadd.s32 127, %v728_v25 }
 0x886   :  { %v727_v27 = vor.u32 %v726_v26, %v725_v18  ;;  %v730_v49 = vshll.u32 %v729_v3, 23 }
 0x888   :  { %v731_v60 = vor.u32 4788187, %v730_v49  ;;  %v734_v33 = vcvt.s32.f32 %v727_v27 }
 0x88a   :  { %v732_v32 = vand.u32 2147483647, %v731_v60 }
 0x88c   :  { %v735_v34 = vmul.f32 %v734_v33, %v732_v32 }
 0x88e   :  { %v736_v35 = vxor.u32 2147483648, %v735_v34 }
 0x890   :  { %v737_v37 = vsel %vm616_vm3, %v736_v35, %v735_v34 }
 0x891   :  { %v740_v38 = vsel %vm1802_vm4, %v1743_v45, %v737_v37  ;;  %v779_v45 = vperm.slane %v1625_v7, 7 }
 0x892   :  { %v742_v39 = vmul.f32 %v740_v38, %v740_v38 }
 0x894   :  { %v743_v40 = vmul.f32 -0.001358992, %v742_v39  ;;  %v750_v42 = vmul.f32 -0.00019511016, %v742_v39 }
 0x896   :  { %v744_v47 = vadd.f32 0.041655596, %v743_v40  ;;  %v751_v48 = vadd.f32 0.008332121, %v750_v42 }
 0x898   :  { %v745_v50 = vmul.f32 %v744_v47, %v742_v39  ;;  %v752_v52 = vmul.f32 %v751_v48, %v742_v39 }
 0x89a   :  { %v746_v55 = vadd.f32 -0.4999988, %v745_v50  ;;  %v753_v56 = vadd.f32 -0.16666654, %v752_v52 }
 0x89c   :  { %v747_v57 = vmul.f32 %v746_v55, %v742_v39  ;;  %v754_v59 = vmul.f32 %v753_v56, %v742_v39 }
 0x89e   :  { %v748_v62 = vadd.f32 1.0, %v747_v57  ;;  %v755_v0 = vadd.f32 1.0, %v754_v59 }
 0x8a0   :  { %v756_v5 = vmul.f32 %v755_v0, %v740_v38  ;;  %v764_v8 = vxor.u32 2147483648, %v748_v62 }
 0x8a2   :  { %v761_v9 = vxor.u32 2147483648, %v756_v5  ;;  %v765_v12 = vsel %vm763_vm7, %v764_v8, %v756_v5 }
 0x8a4   :  { %v762_v11 = vsel %vm760_vm6, %v748_v62, %v761_v9 }
 0x8a5   :  { %v766_v13 = vsel %vm759_vm8, %v762_v11, %v765_v12 }
 0x8a6   :  { %v767_v1 = vsel %vm757_vm9, nan, %v766_v13 }
 0x8a7   :  { %769 = vrot.lane.b32.xlu0 %v767_v1, %s1502_s0 }
 0x919   :  { %v770_v53 = vpop.permute.xlu0 %769 }
 0x91a   :  { %v1813_v15 = vadd.f32 %v770_v53, %v767_v1 }
 0x91c   :  { %v1817_v19 = vadd.f32 %v1813_v15, %v1737_v30 }
 0x91e   :  { %1216 = vmatmul.msk.f32.vlgmr.msra.gmra.mxu1 %vm210_vm1, %v1817_v19 }
 0x99b   :  { %v800_v20 = vpop.f32.mrf.mxu1 }
 0x99c   :  { %v1822_v21 = vadd.f32 %v800_v20, %v779_v45 }
 0x99e   :  { %v806_v22 = vand.u32 2139095040, %v1822_v21  ;;  %v803_v16 = vand.u32 2147483647, %v1822_v21  ;;  %vm805_vm8 = vcmp.lt.s32.totalorder %v1822_v21, 0 }
 0x9a0   :  { %v807_v23 = vshrl.u32 %v806_v22, 23  ;;  %v810_v30 = vand.u32 8388607, %v803_v16  ;;  %vm1881_vm9 = vcmp.le.f32.partialorder %v803_v16, 0.7853982 }
 0x9a2   :  { %v1217_v43 = vadd.s32 4294967169, %v807_v23  ;;  %v811_v3 = vor.u32 8388608, %v810_v30 }
 0x9a4   :  { %v813_v24 = vadd.s32 1, %v1217_v43  ;;  %v1840_v40 = vshll.u32 %v811_v3, 8 }
 0x9a6   :  { %vm814_vm10 = vcmp.gt.s32.totalorder %v813_v24, 0  ;;  %v852_v17 = vand.u32 65535, %v1840_v40  ;;  %v853_v59 = vshrl.u32 %v1840_v40, 16 }
 0x9a7   :  { %v815_v25 = vsel %vm814_vm10, %v813_v24, 0 }
 0x9a8   :  { %v817_v18 = vand.u32 31, %v815_v25  ;;  %v1828_v27 = vshrl.u32 %v815_v25, 5 }
 0x9aa   :  { %v818_v26 = vsub.s32 32, %v817_v18  ;;  %v829_v7 = vshll.u32 %v1505_v61, %v817_v18  ;;  %v832_v49 = vshll.u32 %v1506_v63, %v817_v18  ;;  %v820_v60 = vshll.u32 %v1508_v4, %v817_v18 }
 0x9ab   :  { %v823_v33 = vshll.u32 %v1509_v6, %v817_v18  ;;  %v826_v35 = vshll.u32 %v1510_v10, %v817_v18  ;;  %vm838_vm11 = vcmp.lt.s32.totalorder %v1828_v27, 4  ;;  %vm835_vm12 = vcmp.lt.s32.totalorder %v1828_v27, 1 }
 0x9ac   :  { %v830_v29 = vshrl.u32 %v1506_v63, %v818_v26  ;;  %v833_v31 = vshrl.u32 %v1507_v2, %v818_v26  ;;  %v821_v32 = vshrl.u32 %v1509_v6, %v818_v26  ;;  %v824_v34 = vshrl.u32 %v1510_v10, %v818_v26 }
 0x9ad   :  { %v827_v36 = vshrl.u32 %v1505_v61, %v818_v26  ;;  %vm837_vm13 = vcmp.lt.s32.totalorder %v1828_v27, 3  ;;  %vm836_vm14 = vcmp.lt.s32.totalorder %v1828_v27, 2  ;;  %v819_v3 = vshrl.u32 %v1508_v4, %v818_v26 }
 0x9ae   :  { %v831_v37 = vor.u32 %v830_v29, %v829_v7  ;;  %v834_v38 = vor.u32 %v833_v31, %v832_v49  ;;  %v822_v39 = vor.u32 %v821_v32, %v820_v60  ;;  %v825_v42 = vor.u32 %v824_v34, %v823_v33 }
 0x9af   :  { %v828_v44 = vor.u32 %v827_v36, %v826_v35 }
 0x9b0   :  { %v844_v47 = vsel %vm838_vm11, %v831_v37, 920167782  ;;  %v848_v48 = vsel %vm838_vm11, %v834_v38, 1326507024  ;;  %v843_v50 = vsel %vm835_vm12, %v822_v39, %v825_v42  ;;  %v839_v32 = vsel %vm835_vm12, %v819_v3, %v822_v39 }
 0x9b1   :  { %v845_v52 = vsel %vm837_vm13, %v828_v44, %v844_v47  ;;  %v847_v54 = vsel %vm835_vm12, %v825_v42, %v828_v44  ;;  %v849_v56 = vsel %vm837_vm13, %v831_v37, %v848_v48  ;;  %v840_v30 = vsel %vm838_vm11, %v828_v44, 2102212464 }
 0x9b2   :  { %v846_v55 = vsel %vm836_vm14, %v843_v50, %v845_v52  ;;  %v850_v57 = vsel %vm836_vm14, %v847_v54, %v849_v56  ;;  %v841_v33 = vsel %vm837_vm13, %v825_v42, %v840_v30  ;;  %vm946_vm13 = vweird.f32 %v1822_v21 }
 0x9b3   :  { %v876_v62 = vand.u32 65535, %v846_v55  ;;  %v877_v0 = vshrl.u32 %v846_v55, 16  ;;  %v854_v41 = vand.u32 65535, %v850_v57  ;;  %v855_v5 = vshrl.u32 %v850_v57, 16 }
 0x9b4   :  { %v842_v44 = vsel %vm836_vm14, %v839_v32, %v841_v33 }
 0x9b5   :  { %v879_v8 = vmul.u32 %v877_v0, %v852_v17  ;;  %v880_v9 = vmul.u32 %v876_v62, %v853_v59  ;;  %v857_v11 = vmul.u32 %v855_v5, %v852_v17  ;;  %v858_v12 = vmul.u32 %v854_v41, %v853_v59 }
 0x9b6   :  { %v878_v13 = vmul.u32 %v876_v62, %v852_v17  ;;  %v856_v14 = vmul.u32 %v854_v41, %v852_v17  ;;  %v881_v53 = vmul.u32 %v877_v0, %v853_v59  ;;  %v859_v45 = vmul.u32 %v855_v5, %v853_v59 }
 0x9b7   :  { %v882_v1 = vshll.u32 %v879_v8, 16  ;;  %v860_v58 = vshll.u32 %v857_v11, 16  ;;  %v884_v20 = vshll.u32 %v880_v9, 16  ;;  %v862_v23 = vshll.u32 %v858_v12, 16 }
 0x9b8   :  { %v883_v31 = vshrl.u32 %v879_v8, 16  ;;  %v861_v34 = vshrl.u32 %v857_v11, 16  ;;  %v885_v36 = vshrl.u32 %v880_v9, 16  ;;  %v863_v38 = vshrl.u32 %v858_v12, 16 }
 0x9b9   :  { %vm886_vm15 = vc.u32 %v878_v13, %v882_v1  ;;  %v888_v22 = vadd.s32 %v882_v1, %v878_v13  ;;  %vm864_vm0 = vc.u32 %v856_v14, %v860_v58  ;;  %v866_v43 = vadd.s32 %v860_v58, %v856_v14  ;;  %v966_v14 = vld [vmem:[#allocation12 + $0x18] sm:$0xff]  ;;  %v965_v58 = vld [vmem:[#allocation12 + $0x10] sm:$0xff] }
 0x9ba   :  { %v887_v24 = vsel %vm886_vm15, 1, %v1511_v51  ;;  %v865_v25 = vsel %vm864_vm0, 1, %v1511_v51  ;;  %v896_v54 = vmul.u32 %v1840_v40, %v842_v44  ;;  %983 = vmatpush.msrb.mxu2 %v966_v14 }
 0x9bb   :  { %v889_v18 = vadd.s32 %v887_v24, %v881_v53  ;;  %vm890_vm2 = vc.u32 %v888_v22, %v884_v20  ;;  %v867_v7 = vadd.s32 %v865_v25, %v859_v45  ;;  %vm868_vm3 = vc.u32 %v866_v43, %v862_v23 }
 0x9bc   :  { %v891_v49 = vsel %vm890_vm2, 1, %v1511_v51  ;;  %v869_v29 = vsel %vm868_vm3, 1, %v1511_v51  ;;  %v892_v50 = vadd.s32 %v888_v22, %v884_v20  ;;  %984 = vmatpush.msrb.mxu2 %v965_v58 }
 0x9bd   :  { %v893_v60 = vadd.s32 %v891_v49, %v889_v18  ;;  %v871_v35 = vadd.s32 %v869_v29, %v867_v7 }
 0x9bf   :  { %v894_v37 = vadd.s32 %v893_v60, %v883_v31  ;;  %v872_v26 = vadd.s32 %v871_v35, %v861_v34 }
 0x9c1   :  { %v895_v47 = vadd.s32 %v894_v37, %v885_v36  ;;  %v873_v48 = vadd.s32 %v872_v26, %v863_v38 }
 0x9c3   :  { %v899_v52 = vadd.s32 1, %v895_v47  ;;  %vm898_vm4 = vc.u32 %v873_v48, %v892_v50  ;;  %v897_v5 = vadd.s32 %v892_v50, %v873_v48 }
 0x9c5   :  { %v900_v39 = vsel %vm898_vm4, %v899_v52, %v895_v47 }
 0x9c6   :  { %v901_v55 = vadd.s32 %v900_v39, %v896_v54 }
 0x9c8   :  { %v902_v56 = vadd.s32 536870912, %v901_v55 }
 0x9ca   :  { %v903_v42 = vshrl.u32 %v902_v56, 30  ;;  %v963_v56 = vld [vmem:[#allocation12] sm:$0xff] }
 0x9cc   :  { %v904_v17 = vshll.u32 %v903_v42, 30  ;;  %v927_v7 = vsub.s32 4, %v903_v42 }
 0x9ce   :  { %v905_v57 = vsub.s32 %v901_v55, %v904_v17  ;;  %v928_v32 = vsel %vm805_vm8, %v927_v7, %v903_v42  ;;  %v964_v55 = vld [vmem:[#allocation12 + $0x8] sm:$0xff] }
 0x9cf   :  { %v930_v16 = vsel %vm1881_vm9, 0, %v928_v32  ;;  %985 = vmatpush.msrb.mxu2 %v964_v55 }
 0x9d0   :  { %vm906_vm6 = vcmp.lt.s32.totalorder %v905_v57, 0  ;;  %v907_v59 = vsub.s32 0, %v905_v57  ;;  %v947_v26 = vand.u32 3, %v930_v16 }
 0x9d1   :  { %986 = vmatpush.msrb.mxu2 %v963_v56 }
 0x9d2   :  { %v908_v62 = vsel %vm906_vm6, %v907_v59, %v905_v57  ;;  %vm949_vm10 = vcmp.eq.s32.totalorder %v947_v26, 0  ;;  %vm952_vm11 = vcmp.eq.s32.totalorder %v947_v26, 2  ;;  %vm948_vm12 = vcmp.lt.s32.totalorder %v947_v26, 2  ;;  %v1897_v59 = vld [vmem:[#allocation15 + $0x8] sm:$0xff] }
 0x9d3   :  { %v909_v0 = vclz %v908_v62 }
 0x9d5   :  { %v1218_v41 = vadd.s32 4294967294, %v909_v0 }
 0x9d7   :  { %vm1219_vm7 = vcmp.lt.s32.totalorder %v1218_v41, 0 }
 0x9d8   :  { %v912_v27 = vsel %vm1219_vm7, 0, %v1218_v41 }
 0x9d9   :  { %v913_v8 = vsub.s32 32, %v912_v27  ;;  %v917_v9 = vsub.s32 4294967266, %v912_v27  ;;  %v914_v11 = vshll.u32 %v905_v57, %v912_v27 }
 0x9db   :  { %v915_v12 = vshrl.u32 %v897_v5, %v913_v8  ;;  %v918_v40 = vadd.s32 127, %v917_v9 }
 0x9dd   :  { %v916_v13 = vor.u32 %v915_v12, %v914_v11  ;;  %v919_v1 = vshll.u32 %v918_v40, 23 }
 0x9df   :  { %v920_v53 = vor.u32 4788187, %v919_v1  ;;  %v923_v20 = vcvt.s32.f32 %v916_v13 }
 0x9e1   :  { %v921_v45 = vand.u32 2147483647, %v920_v53 }
 0x9e3   :  { %v924_v22 = vmul.f32 %v923_v20, %v921_v45 }
 0x9e5   :  { %v925_v23 = vxor.u32 2147483648, %v924_v22 }
 0x9e7   :  { %v926_v24 = vsel %vm805_vm8, %v925_v23, %v924_v22 }
 0x9e8   :  { %v929_v30 = vsel %vm1881_vm9, %v1822_v21, %v926_v24  ;;  %v967_v21 = vperm.slane %v1897_v59, 0 }
 0x9e9   :  { %v931_v25 = vmul.f32 %v929_v30, %v929_v30 }
 0x9eb   :  { %v932_v18 = vmul.f32 -0.001358992, %v931_v25  ;;  %v939_v3 = vmul.f32 -0.00019511016, %v931_v25 }
 0x9ed   :  { %v933_v49 = vadd.f32 0.041655596, %v932_v18  ;;  %v940_v29 = vadd.f32 0.008332121, %v939_v3 }
 0x9ef   :  { %v934_v31 = vmul.f32 %v933_v49, %v931_v25  ;;  %v941_v60 = vmul.f32 %v940_v29, %v931_v25 }
 0x9f1   :  { %v935_v33 = vadd.f32 -0.4999988, %v934_v31  ;;  %v942_v34 = vadd.f32 -0.16666654, %v941_v60 }
 0x9f3   :  { %v936_v35 = vmul.f32 %v935_v33, %v931_v25  ;;  %v943_v36 = vmul.f32 %v942_v34, %v931_v25 }
 0x9f5   :  { %v937_v37 = vadd.f32 1.0, %v936_v35  ;;  %v944_v38 = vadd.f32 1.0, %v943_v36 }
 0x9f7   :  { %v945_v44 = vmul.f32 %v944_v38, %v929_v30  ;;  %v953_v47 = vxor.u32 2147483648, %v937_v37 }
 0x9f9   :  { %v950_v48 = vxor.u32 2147483648, %v945_v44  ;;  %v954_v52 = vsel %vm952_vm11, %v953_v47, %v945_v44 }
 0x9fb   :  { %v951_v50 = vsel %vm949_vm10, %v937_v37, %v950_v48 }
 0x9fc   :  { %v955_v54 = vsel %vm948_vm12, %v951_v50, %v954_v52 }
 0x9fd   :  { %v956_v39 = vsel %vm946_vm13, nan, %v955_v54 }
 0x9fe   :  { %958 = vrot.lane.b32.xlu0 %v956_v39, %s1502_s0 }
 0xa70   :  { %v959_v42 = vpop.permute.xlu0 %958 }
 0xa71   :  { %v961_v17 = vadd.f32 %v959_v42, %v956_v39 }
 0xa73   :  { %v1893_v57 = vadd.f32 %v961_v17, %v1817_v19 }
 0xa75   :  { %1220 = vmatmul.msk.f32.vlgmr.msrb.gmra.mxu2 %vm210_vm1, %v1893_v57 }
 0xaf8   :  { %v988_v62 = vpop.f32.mrf.mxu2 }
 0xaf9   :  { %v1900_v0 = vadd.f32 %v988_v62, %v967_v21 }
 0xafb   :  { %v994_v41 = vand.u32 2139095040, %v1900_v0  ;;  %v991_v8 = vand.u32 2147483647, %v1900_v0  ;;  %vm993_vm12 = vcmp.lt.s32.totalorder %v1900_v0, 0 }
 0xafd   :  { %v995_v27 = vshrl.u32 %v994_v41, 23  ;;  %v998_v19 = vand.u32 8388607, %v991_v8  ;;  %vm1959_vm13 = vcmp.le.f32.partialorder %v991_v8, 0.7853982 }
 0xaff   :  { %v1221_v5 = vadd.s32 4294967169, %v995_v27  ;;  %v999_v13 = vor.u32 8388608, %v998_v19 }
 0xb01   :  { %v1001_v9 = vadd.s32 1, %v1221_v5  ;;  %v1918_v7 = vshll.u32 %v999_v13, 8 }
 0xb03   :  { %vm1002_vm14 = vcmp.gt.s32.totalorder %v1001_v9, 0  ;;  %v1040_v32 = vand.u32 65535, %v1918_v7  ;;  %v1041_v34 = vshrl.u32 %v1918_v7, 16 }
 0xb04   :  { %v1003_v11 = vsel %vm1002_vm14, %v1001_v9, 0 }
 0xb05   :  { %v1005_v12 = vand.u32 31, %v1003_v11  ;;  %v1906_v1 = vshrl.u32 %v1003_v11, 5 }
 0xb07   :  { %v1006_v40 = vsub.s32 32, %v1005_v12  ;;  %v1017_v14 = vshll.u32 %v1505_v61, %v1005_v12  ;;  %v1020_v58 = vshll.u32 %v1506_v63, %v1005_v12  ;;  %v1008_v20 = vshll.u32 %v1508_v4, %v1005_v12 }
 0xb08   :  { %v1011_v23 = vshll.u32 %v1509_v6, %v1005_v12  ;;  %v1014_v24 = vshll.u32 %v1510_v10, %v1005_v12  ;;  %vm1026_vm15 = vcmp.lt.s32.totalorder %v1906_v1, 4  ;;  %vm1023_vm0 = vcmp.lt.s32.totalorder %v1906_v1, 1 }
 0xb09   :  { %v1018_v53 = vshrl.u32 %v1506_v63, %v1006_v40  ;;  %v1021_v45 = vshrl.u32 %v1507_v2, %v1006_v40  ;;  %v1009_v22 = vshrl.u32 %v1509_v6, %v1006_v40  ;;  %v1012_v43 = vshrl.u32 %v1510_v10, %v1006_v40 }
 0xb0a   :  { %v1015_v30 = vshrl.u32 %v1505_v61, %v1006_v40  ;;  %vm1025_vm2 = vcmp.lt.s32.totalorder %v1906_v1, 3  ;;  %vm1024_vm3 = vcmp.lt.s32.totalorder %v1906_v1, 2  ;;  %v1007_v9 = vshrl.u32 %v1508_v4, %v1006_v40 }
 0xb0b   :  { %v1019_v25 = vor.u32 %v1018_v53, %v1017_v14  ;;  %v1022_v18 = vor.u32 %v1021_v45, %v1020_v58  ;;  %v1010_v3 = vor.u32 %v1009_v22, %v1008_v20  ;;  %v1013_v63 = vor.u32 %v1012_v43, %v1011_v23 }
 0xb0c   :  { %v1016_v2 = vor.u32 %v1015_v30, %v1014_v24 }
 0xb0d   :  { %v1032_v49 = vsel %vm1026_vm15, %v1019_v25, 920167782  ;;  %v1036_v6 = vsel %vm1026_vm15, %v1022_v18, 1326507024  ;;  %v1031_v61 = vsel %vm1023_vm0, %v1010_v3, %v1013_v63  ;;  %v1027_v58 = vsel %vm1023_vm0, %v1007_v9, %v1010_v3 }
 0xb0e   :  { %v1033_v10 = vsel %vm1025_vm2, %v1016_v2, %v1032_v49  ;;  %v1035_v29 = vsel %vm1023_vm0, %v1013_v63, %v1016_v2  ;;  %v1037_v60 = vsel %vm1025_vm2, %v1019_v25, %v1036_v6  ;;  %v1028_v41 = vsel %vm1026_vm15, %v1016_v2, 2102212464 }
 0xb0f   :  { %v1034_v31 = vsel %vm1024_vm3, %v1031_v61, %v1033_v10  ;;  %v1038_v33 = vsel %vm1024_vm3, %v1035_v29, %v1037_v60  ;;  %v1029_v53 = vsel %vm1025_vm2, %v1013_v63, %v1028_v41  ;;  %vm1134_vm2 = vweird.f32 %v1900_v0 }
 0xb10   :  { %v1064_v16 = vand.u32 65535, %v1034_v31  ;;  %v1065_v35 = vshrl.u32 %v1034_v31, 16  ;;  %v1042_v36 = vand.u32 65535, %v1038_v33  ;;  %v1043_v37 = vshrl.u32 %v1038_v33, 16 }
 0xb11   :  { %v1030_v40 = vsel %vm1024_vm3, %v1027_v58, %v1029_v53  ;;  %vm1170_vm3 = vcmask 785408  }
 0xb12   :  { %v1067_v38 = vmul.u32 %v1065_v35, %v1040_v32  ;;  %v1068_v26 = vmul.u32 %v1064_v16, %v1041_v34  ;;  %v1045_v44 = vmul.u32 %v1043_v37, %v1040_v32  ;;  %v1046_v47 = vmul.u32 %v1042_v36, %v1041_v34 }
 0xb13   :  { %v1066_v48 = vmul.u32 %v1064_v16, %v1040_v32  ;;  %v1044_v52 = vmul.u32 %v1042_v36, %v1040_v32  ;;  %v1069_v39 = vmul.u32 %v1065_v35, %v1041_v34  ;;  %v1047_v55 = vmul.u32 %v1043_v37, %v1041_v34 }
 0xb14   :  { %v1070_v50 = vshll.u32 %v1067_v38, 16  ;;  %v1048_v54 = vshll.u32 %v1045_v44, 16  ;;  %v1072_v56 = vshll.u32 %v1068_v26, 16  ;;  %v1050_v17 = vshll.u32 %v1046_v47, 16 }
 0xb15   :  { %v1071_v13 = vshrl.u32 %v1067_v38, 16  ;;  %v1049_v45 = vshrl.u32 %v1045_v44, 16  ;;  %v1073_v22 = vshrl.u32 %v1068_v26, 16  ;;  %v1051_v43 = vshrl.u32 %v1046_v47, 16 }
 0xb16   :  { %vm1074_vm4 = vc.u32 %v1066_v48, %v1070_v50  ;;  %v1076_v42 = vadd.s32 %v1070_v50, %v1066_v48  ;;  %vm1052_vm6 = vc.u32 %v1044_v52, %v1048_v54  ;;  %v1054_v21 = vadd.s32 %v1048_v54, %v1044_v52 }
 0xb17   :  { %v1075_v62 = vsel %vm1074_vm4, 1, %v1511_v51  ;;  %v1053_v27 = vsel %vm1052_vm6, 1, %v1511_v51  ;;  %v1084_v18 = vmul.u32 %v1918_v7, %v1030_v40  ;;  %v1167_v40 = vld [vmem:[#allocation13 + $0x50] sm:$0xff] }
 0xb18   :  { %v1077_v5 = vadd.s32 %v1075_v62, %v1069_v39  ;;  %vm1078_vm7 = vc.u32 %v1076_v42, %v1072_v56  ;;  %v1055_v19 = vadd.s32 %v1053_v27, %v1047_v55  ;;  %vm1056_vm8 = vc.u32 %v1054_v21, %v1050_v17 }
 0xb19   :  { %v1079_v11 = vsel %vm1078_vm7, 1, %v1511_v51  ;;  %v1057_v12 = vsel %vm1056_vm8, 1, %v1511_v51  ;;  %v1080_v51 = vadd.s32 %v1076_v42, %v1072_v56 }
 0xb1a   :  { %v1081_v14 = vadd.s32 %v1079_v11, %v1077_v5  ;;  %v1059_v20 = vadd.s32 %v1057_v12, %v1055_v19 }
 0xb1c   :  { %v1082_v23 = vadd.s32 %v1081_v14, %v1071_v13  ;;  %v1060_v4 = vadd.s32 %v1059_v20, %v1049_v45 }
 0xb1e   :  { %v1083_v24 = vadd.s32 %v1082_v23, %v1073_v22  ;;  %v1061_v30 = vadd.s32 %v1060_v4, %v1051_v43  ;;  %v1168_v4 = vld [vmem:[#allocation13 + $0x58] sm:$0xff] }
 0xb1f   :  { %1178 = vmatpush.msra.mxu3 %v1168_v4 }
 0xb20   :  { %v1087_v25 = vadd.s32 1, %v1083_v24  ;;  %vm1086_vm9 = vc.u32 %v1061_v30, %v1080_v51  ;;  %v1085_v32 = vadd.s32 %v1080_v51, %v1061_v30  ;;  %v1165_v30 = vld [vmem:[#allocation13 + $0x40] sm:$0xff]  ;;  %v1164_v51 = vld [vmem:[#allocation13 + $0x38] sm:$0xff] }
 0xb21   :  { %1179 = vmatpush.msra.mxu3 %v1167_v40 }
 0xb22   :  { %v1088_v3 = vsel %vm1086_vm9, %v1087_v25, %v1083_v24  ;;  %v1166_v24 = vld [vmem:[#allocation13 + $0x48] sm:$0xff]  ;;  %v1163_v25 = vld [vmem:[#allocation13 + $0x30] sm:$0xff] }
 0xb23   :  { %v1089_v2 = vadd.s32 %v1088_v3, %v1084_v18  ;;  %1180 = vmatpush.msra.mxu3 %v1166_v24  ;;  %v1162_v18 = vld [vmem:[#allocation13 + $0x28] sm:$0xff]  ;;  %v1161_v3 = vld [vmem:[#allocation13 + $0x20] sm:$0xff] }
 0xb25   :  { %v1090_v49 = vadd.s32 536870912, %v1089_v2  ;;  %1181 = vmatpush.msra.mxu3 %v1165_v30 }
 0xb27   :  { %v1091_v63 = vshrl.u32 %v1090_v49, 30  ;;  %1182 = vmatpush.msra.mxu3 %v1164_v51  ;;  %v1158_v49 = vld [vmem:[#allocation13 + $0x8] sm:$0xff] }
 0xb29   :  { %v1092_v6 = vshll.u32 %v1091_v63, 30  ;;  %v1115_v42 = vsub.s32 4, %v1091_v63  ;;  %1183 = vmatpush.msra.mxu3 %v1163_v25 }
 0xb2b   :  { %v1093_v61 = vsub.s32 %v1089_v2, %v1092_v6  ;;  %v1116_v27 = vsel %vm993_vm12, %v1115_v42, %v1091_v63  ;;  %1184 = vmatpush.msra.mxu3 %v1162_v18  ;;  %v1159_v2 = vld [vmem:[#allocation13 + $0x10] sm:$0xff] }
 0xb2c   :  { %v1118_v8 = vsel %vm1959_vm13, 0, %v1116_v27 }
 0xb2d   :  { %vm1094_vm10 = vcmp.lt.s32.totalorder %v1093_v61, 0  ;;  %v1095_v10 = vsub.s32 0, %v1093_v61  ;;  %v1135_v14 = vand.u32 3, %v1118_v8  ;;  %1185 = vmatpush.msra.mxu3 %v1161_v3 }
 0xb2f   :  { %v1096_v29 = vsel %vm1094_vm10, %v1095_v10, %v1093_v61  ;;  %vm1137_vm14 = vcmp.eq.s32.totalorder %v1135_v14, 0  ;;  %vm1140_vm15 = vcmp.eq.s32.totalorder %v1135_v14, 2  ;;  %vm1136_vm0 = vcmp.lt.s32.totalorder %v1135_v14, 2  ;;  %v1157_v10 = vld [vmem:[#allocation13] sm:$0xff] }
 0xb30   :  { %v1097_v31 = vclz %v1096_v29  ;;  %v774_v29 = vadd.f32 %v1813_v15, %v1732_v28 }
 0xb32   :  { %v1222_v60 = vadd.s32 4294967294, %v1097_v31 }
 0xb34   :  { %vm1223_vm11 = vcmp.lt.s32.totalorder %v1222_v60, 0 }
 0xb35   :  { %v1100_v1 = vsel %vm1223_vm11, 0, %v1222_v60 }
 0xb36   :  { %v1101_v33 = vsub.s32 32, %v1100_v1  ;;  %v1105_v34 = vsub.s32 4294967266, %v1100_v1  ;;  %v1102_v16 = vshll.u32 %v1093_v61, %v1100_v1 }
 0xb38   :  { %v1103_v35 = vshrl.u32 %v1085_v32, %v1101_v33  ;;  %v1106_v7 = vadd.s32 127, %v1105_v34  ;;  %v1169_v32 = vperm.slane %v1897_v59, 1 }
 0xb3a   :  { %v1104_v36 = vor.u32 %v1103_v35, %v1102_v16  ;;  %v1107_v37 = vshll.u32 %v1106_v7, 23 }
 0xb3c   :  { %v1108_v38 = vor.u32 4788187, %v1107_v37  ;;  %v1111_v44 = vcvt.s32.f32 %v1104_v36 }
 0xb3e   :  { %v1109_v26 = vand.u32 2147483647, %v1108_v38 }
 0xb40   :  { %v1112_v47 = vmul.f32 %v1111_v44, %v1109_v26 }
 0xb42   :  { %v1113_v48 = vxor.u32 2147483648, %v1112_v47 }
 0xb44   :  { %v1114_v52 = vsel %vm993_vm12, %v1113_v48, %v1112_v47 }
 0xb45   :  { %v1117_v54 = vsel %vm1959_vm13, %v1900_v0, %v1114_v52  ;;  %v1160_v0 = vld [vmem:[#allocation13 + $0x18] sm:$0xff] }
 0xb46   :  { %v1119_v39 = vmul.f32 %v1117_v54, %v1117_v54  ;;  %1186 = vmatpush.msra.mxu3 %v1160_v0 }
 0xb48   :  { %v1120_v55 = vmul.f32 -0.001358992, %v1119_v39  ;;  %v1127_v56 = vmul.f32 -0.00019511016, %v1119_v39  ;;  %1187 = vmatpush.msra.mxu3 %v1159_v2 }
 0xb4a   :  { %v1121_v17 = vadd.f32 0.041655596, %v1120_v55  ;;  %v1128_v21 = vadd.f32 0.008332121, %v1127_v56  ;;  %1188 = vmatpush.msra.mxu3 %v1158_v49 }
 0xb4c   :  { %v1122_v62 = vmul.f32 %v1121_v17, %v1119_v39  ;;  %v1129_v41 = vmul.f32 %v1128_v21, %v1119_v39  ;;  %1189 = vmatpush.msra.mxu3 %v1157_v10 }
 0xb4e   :  { %v1123_v5 = vadd.f32 -0.4999988, %v1122_v62  ;;  %v1130_v9 = vadd.f32 -0.16666654, %v1129_v41 }
 0xb50   :  { %v1124_v19 = vmul.f32 %v1123_v5, %v1119_v39  ;;  %v1131_v11 = vmul.f32 %v1130_v9, %v1119_v39 }
 0xb52   :  { %v1125_v12 = vadd.f32 1.0, %v1124_v19  ;;  %v1132_v13 = vadd.f32 1.0, %v1131_v11 }
 0xb54   :  { %v1133_v58 = vmul.f32 %v1132_v13, %v1117_v54  ;;  %v1141_v53 = vxor.u32 2147483648, %v1125_v12 }
 0xb56   :  { %v1138_v45 = vxor.u32 2147483648, %v1133_v58  ;;  %v1142_v22 = vsel %vm1140_vm15, %v1141_v53, %v1133_v58 }
 0xb58   :  { %v1139_v20 = vsel %vm1137_vm14, %v1125_v12, %v1138_v45 }
 0xb59   :  { %v1143_v23 = vsel %vm1136_vm0, %v1139_v20, %v1142_v22 }
 0xb5a   :  { %v1144_v43 = vsel %vm1134_vm2, nan, %v1143_v23 }
 0xb5b   :  { %1146 = vrot.lane.b32.xlu2 %v1144_v43, %s1502_s0 }
 0xbb5   :  { %v1147_v63 = vpop.permute.xlu2 %1146 }
 0xbb6   :  { %v1149_v6 = vadd.f32 %v1147_v63, %v1144_v43 }
 0xbb8   :  { %v1150_v61 = vadd.f32 %v1149_v6, %v1893_v57 }
 0xbba   :  { %1152 = vrot.lane.b32.xlu0 %v1150_v61, %s1512_s22 }
 0xc2c   :  { %v1153_v31 = vpop.permute.xlu0 %1152 }
 0xc2d   :  { %v1155_v60 = vsel %vm210_vm1, %v1648_v46, %v1153_v31 }
 0xc2e   :  { %v1156_v1 = vsel %vm590_vm5, %v1155_v60, %v774_v29 }
 0xc2f   :  { %1224 = vmatmul.msk.f32.vlgmr.msra.gmra.mxu3 %vm1170_vm3, %v1156_v1 }
 0xcb2   :  { %v1191_v33 = vpop.f32.mrf.mxu3 }
 0xcb3   :  { %v1192_v34 = vadd.f32 %v1191_v33, %v1169_v32 }
 0xcb5   :  { %1194 = vst [vmem:[%s1990_s10] sm:$0xff] %v1192_v34 }
 0xcb6   :  { %1199 = vsyncpa [#allocation3], 1 }
 0xcb7   :  { %1200 = vsyncpa [#allocation5], 1 }
 0xcb8   :  { %1201 = vsyncpa [#allocation8], 1 }
 0xcb9   :  { %1202 = vsyncpa [#allocation11], 1 }
 0xcba   :  { %1203 = vsyncpa [#allocation14], 1 }

</bundles_post_ra>
